<compile_context>
chip_gen: v5e
topology: v5e:2x2
jax: 0.10.0
libtpu: 0.0.40
codegen_flags: <defaults>
</compile_context>

<pallas_src>
import jax
import jax.numpy as jnp
from jax.experimental import pallas as pl
from jax.experimental.pallas import tpu as pltpu

# ---- model dims (from the PyTorch module) ----
DH = 50            # hidden size per direction (logical)
DW = 300           # embedding dim
N_CLASSES = 4
PAD = 100          # padding_idx (stand-in for len(word2id))
N_VOCAB = PAD + 1

HP = 64            # padded hidden per direction (lane aligned)
F = 2 * HP         # 128-wide [fwd | bwd] slab


# --------------------------------------------------------------------------
# Pallas kernel: 3 stacked bidirectional recurrences + padded linear head
# --------------------------------------------------------------------------
def _rnn_kernel(proj0_ref,                    # (T, Bb, F)  layer-0 in-proj (+bias)
                whh0_ref,                     # (F, F)      block-diag recurrent W
                wp1_ref, b1_ref, whh1_ref,    # layer-1: in-proj W, bias, recurrent W
                wp2_ref, b2_ref, whh2_ref,    # layer-2
                wlin_ref, blin_ref,           # (F, F), (1, F) padded linear head
                out_ref,                      # (Bb, F)     padded logits
                slab_a, slab_b):              # (T*Bb, F)   VMEM scratch slabs
    T, Bb, _ = proj0_ref.shape

    def recurrence(get_in, whh, out_slab):
        # Interleave fwd (time s) and bwd (time T-1-s); both directions share
        # one block-diagonal (F,F) MXU matmul and one tanh per step.  Input
        # projections / biases were already hoisted out of this loop.
        state = jnp.zeros((Bb, F), jnp.float32)
        # TODO(synk): switch to lax.fori_loop for large/dynamic T; the static
        # unroll is the right call only for the small fixed T used here.
        for s in range(T):
            r = T - 1 - s
            inp = jnp.concatenate(
                [get_in(s)[:, 0:HP], get_in(r)[:, HP:F]], axis=-1)
            state = jnp.tanh(
                inp + jnp.dot(state, whh, preferred_element_type=jnp.float32))
            out_slab[s * Bb:(s + 1) * Bb, 0:HP] = state[:, 0:HP]   # h_fwd[s]
            out_slab[r * Bb:(r + 1) * Bb, HP:F] = state[:, HP:F]   # h_bwd[r]

    # ---- layer 0 : input projection hoisted to the wrapper ----------------
    recurrence(lambda t: proj0_ref[t], whh0_ref[...], slab_a)

    # ---- layers 1 & 2 : hoist the input projection to one batched MXU
    # matmul (bias folded), then run the fused serial recurrence -------------
    for wp_ref, b_ref, whh_ref in ((wp1_ref, b1_ref, whh1_ref),
                                   (wp2_ref, b2_ref, whh2_ref)):
        slab_b[...] = (jnp.dot(slab_a[...], wp_ref[...],
                               preferred_element_type=jnp.float32)
                       + b_ref[...])
        recurrence(lambda t: slab_b[t * Bb:(t + 1) * Bb, :],
                   whh_ref[...], slab_a)

    # ---- linear head on the last timestep of the top layer -----------------
    last = slab_a[(T - 1) * Bb:T * Bb, :]               # concat(h_f[T-1], h_b[T-1])
    out_ref[...] = (jnp.dot(last, wlin_ref[...],
                            preferred_element_type=jnp.float32)
                    + blin_ref[...])


# --------------------------------------------------------------------------
# Wrapper: embedding gather + hoisted layer-0 projection (XLA) + pallas_call
# --------------------------------------------------------------------------
@jax.jit
def rnn_forward(tokens, params):
    """tokens: (B, T) int32 -> logits (B, 4) f32."""
    kp = params["kernel"]
    B, T = tokens.shape

    # glue (XLA): embedding gather + layer-0 input projection for both
    # directions with bias folded; only the small (T,B,128) tensor is moved.
    x = jnp.take(params["emb"], tokens, axis=0)                    # (B, T, DW)
    proj0 = x.reshape(B * T, DW) @ kp["w0"] + kp["b0"]             # (B*T, F)
    proj0 = proj0.reshape(B, T, F).transpose(1, 0, 2)              # (T, B, F)

    bb = 8 if B % 8 == 0 else B              # batch block ("parallel" grid axis)
    grid = (B // bb,)

    weights = [kp["whh0"], kp["wp1"], kp["b1"], kp["whh1"],
               kp["wp2"], kp["b2"], kp["whh2"], kp["wlin"], kp["blin"]]

    in_specs = [pl.BlockSpec((T, bb, F), lambda i: (0, i, 0))]
    in_specs += [pl.BlockSpec(w.shape, lambda i: (0, 0)) for w in weights]

    out = pl.pallas_call(
        _rnn_kernel,
        out_shape=jax.ShapeDtypeStruct((B, F), jnp.float32),
        grid=grid,
        in_specs=in_specs,
        out_specs=pl.BlockSpec((bb, F), lambda i: (i, 0)),
        scratch_shapes=[pltpu.VMEM((T * bb, F), jnp.float32),
                        pltpu.VMEM((T * bb, F), jnp.float32)],
        compiler_params=pltpu.CompilerParams(
            dimension_semantics=("parallel",)),
    )(proj0, *weights)
    return out[:, :N_CLASSES]


# --------------------------------------------------------------------------
# Parameter init (PyTorch-like) + packing into padded/fused kernel weights
# --------------------------------------------------------------------------
def pack_kernel_params(p):
    def pad_pair_cols(wf, wb):
        """fwd block in lanes 0:DH, bwd block in lanes HP:HP+DH, rest zero."""
        out = jnp.zeros((wf.shape[0], F), jnp.float32)
        return out.at[:, 0:DH].set(wf).at[:, HP:HP + DH].set(wb)

    def block_diag(whf, whb):
        out = jnp.zeros((F, F), jnp.float32)
        return out.at[0:DH, 0:DH].set(whf).at[HP:HP + DH, HP:HP + DH].set(whb)

    kp = {}
    kp["w0"] = pad_pair_cols(p["wih0f"], p["wih0b"])         # (DW, F)
    kp["b0"] = pad_pair_cols(p["b0f"], p["b0b"])             # (1, F)
    kp["whh0"] = block_diag(p["whh0f"], p["whh0b"])          # (F, F)
    for L in (1, 2):
        w = jnp.zeros((F, F), jnp.float32)
        w = w.at[0:DH, 0:DH].set(p[f"wf{L}f"])               # h_fwd_prev -> fwd
        w = w.at[HP:HP + DH, 0:DH].set(p[f"wb{L}f"])         # h_bwd_prev -> fwd
        w = w.at[0:DH, HP:HP + DH].set(p[f"wf{L}b"])         # h_fwd_prev -> bwd
        w = w.at[HP:HP + DH, HP:HP + DH].set(p[f"wb{L}b"])   # h_bwd_prev -> bwd
        kp[f"wp{L}"] = w
        kp[f"b{L}"] = pad_pair_cols(p[f"b{L}f"], p[f"b{L}b"])
        kp[f"whh{L}"] = block_diag(p[f"whh{L}f"], p[f"whh{L}b"])
    wlin = jnp.zeros((F, F), jnp.float32)
    wlin = wlin.at[0:DH, 0:N_CLASSES].set(p["wlinf"])
    wlin = wlin.at[HP:HP + DH, 0:N_CLASSES].set(p["wlinb"])
    kp["wlin"] = wlin
    kp["blin"] = jnp.zeros((1, F), jnp.float32).at[:, 0:N_CLASSES].set(p["blin"])
    return kp


def init_params(key):
    keys = iter(jax.random.split(key, 32))

    def u(shape, bound):
        return jax.random.uniform(next(keys), shape, jnp.float32, -bound, bound)

    s = 1.0 / (DH ** 0.5)
    p = {}
    emb = jax.random.normal(next(keys), (N_VOCAB, DW), jnp.float32) * 0.1
    p["emb"] = emb.at[PAD].set(0.0)                  # padding_idx row is zero

    # layer 0 (input width DW); biases hold (b_ih + b_hh) combined
    p["wih0f"] = u((DW, DH), s); p["whh0f"] = u((DH, DH), s); p["b0f"] = u((1, DH), s)
    p["wih0b"] = u((DW, DH), s); p["whh0b"] = u((DH, DH), s); p["b0b"] = u((1, DH), s)

    # layers 1 & 2 (input width 2*DH, W_ih stored split into fwd/bwd halves)
    for layer in (1, 2):
        for d in ("f", "b"):
            p[f"wf{layer}{d}"] = u((DH, DH), s)
            p[f"wb{layer}{d}"] = u((DH, DH), s)
            p[f"whh{layer}{d}"] = u((DH, DH), s)
            p[f"b{layer}{d}"] = u((1, DH), s)

    sl = 1.0 / ((2 * DH) ** 0.5)
    p["wlinf"] = u((DH, N_CLASSES), sl)
    p["wlinb"] = u((DH, N_CLASSES), sl)
    p["blin"] = u((1, N_CLASSES), sl)

    p["kernel"] = pack_kernel_params(p)              # padded / fused weights
    return p


# --------------------------------------------------------------------------
# Pure-JAX reference (unpadded weights) for correctness checking
# --------------------------------------------------------------------------
def ref_forward(tokens, p):
    x = jnp.take(p["emb"], tokens, axis=0).astype(jnp.float32)   # (B, T, DW)
    B, T, _ = x.shape

    def run_dir(inp, wih, whh, b, reverse):
        h = jnp.zeros((B, DH), jnp.float32)
        outs = [None] * T
        order = range(T - 1, -1, -1) if reverse else range(T)
        for t in order:
            h = jnp.tanh(inp[:, t, :] @ wih + h @ whh + b)
            outs[t] = h
        return jnp.stack(outs, axis=1)

    f = run_dir(x, p["wih0f"], p["whh0f"], p["b0f"], False)
    bwd = run_dir(x, p["wih0b"], p["whh0b"], p["b0b"], True)
    cur = jnp.concatenate([f, bwd], axis=-1)
    for layer in (1, 2):
        wih_f = jnp.concatenate([p[f"wf{layer}f"], p[f"wb{layer}f"]], axis=0)
        wih_b = jnp.concatenate([p[f"wf{layer}b"], p[f"wb{layer}b"]], axis=0)
        f = run_dir(cur, wih_f, p[f"whh{layer}f"], p[f"b{layer}f"], False)
        bwd = run_dir(cur, wih_b, p[f"whh{layer}b"], p[f"b{layer}b"], True)
        cur = jnp.concatenate([f, bwd], axis=-1)
    wlin = jnp.concatenate([p["wlinf"], p["wlinb"]], axis=0)
    return cur[:, -1, :] @ wlin + p["blin"]


if __name__ == "__main__":
    key = jax.random.PRNGKey(0)
    pkey, tkey = jax.random.split(key)
    params = init_params(pkey)

    B, T = 2, 8
    tokens = jax.random.randint(tkey, (B, T), 0, N_VOCAB, dtype=jnp.int32)
    tokens = tokens.at[1, -1].set(PAD)   # exercise the padding row

    out = jax.block_until_ready(rnn_forward(tokens, params))
    ref = ref_forward(tokens, params)

    assert out.shape == (B, N_CLASSES)
    # all-f32 path; small margin kept for MXU default-precision reassociation.
    assert jnp.allclose(out, ref, atol=5e-3, rtol=5e-3), (out, ref)
    print("KERNEL_OK")
</pallas_src>

<mosaic_0001>
module attributes {stable_mosaic.version = 11 : i64} {
  func.func @_rnn_kernel(%arg0: i32, %arg1: memref<8x2x128xf32, #tpu.memory_space<vmem>>, %arg2: memref<128x128xf32, #tpu.memory_space<vmem>>, %arg3: memref<128x128xf32, #tpu.memory_space<vmem>>, %arg4: memref<1x128xf32, #tpu.memory_space<vmem>>, %arg5: memref<128x128xf32, #tpu.memory_space<vmem>>, %arg6: memref<128x128xf32, #tpu.memory_space<vmem>>, %arg7: memref<1x128xf32, #tpu.memory_space<vmem>>, %arg8: memref<128x128xf32, #tpu.memory_space<vmem>>, %arg9: memref<128x128xf32, #tpu.memory_space<vmem>>, %arg10: memref<1x128xf32, #tpu.memory_space<vmem>>, %arg11: memref<2x128xf32, #tpu.memory_space<vmem>>, %arg12: memref<16x128xf32, #tpu.memory_space<vmem>>, %arg13: memref<16x128xf32, #tpu.memory_space<vmem>>) attributes {dimension_semantics = [#tpu.dimension_semantics<parallel>], iteration_bounds = array<i64: 1>, scalar_prefetch = 0 : i64, scratch_operands = 2 : i64, tpu.core_type = #tpu.core_type<tc>, window_params = [{transform_indices = @transform_0, window_bounds = array<i64: 8, 2, 128>}, {pipeline_mode = #tpu.pipeline_mode<synchronous>, transform_indices = @transform_1, window_bounds = array<i64: 128, 128>}, {pipeline_mode = #tpu.pipeline_mode<synchronous>, transform_indices = @transform_2, window_bounds = array<i64: 128, 128>}, {pipeline_mode = #tpu.pipeline_mode<synchronous>, transform_indices = @transform_3, window_bounds = array<i64: 1, 128>}, {pipeline_mode = #tpu.pipeline_mode<synchronous>, transform_indices = @transform_4, window_bounds = array<i64: 128, 128>}, {pipeline_mode = #tpu.pipeline_mode<synchronous>, transform_indices = @transform_5, window_bounds = array<i64: 128, 128>}, {pipeline_mode = #tpu.pipeline_mode<synchronous>, transform_indices = @transform_6, window_bounds = array<i64: 1, 128>}, {pipeline_mode = #tpu.pipeline_mode<synchronous>, transform_indices = @transform_7, window_bounds = array<i64: 128, 128>}, {pipeline_mode = #tpu.pipeline_mode<synchronous>, transform_indices = @transform_8, window_bounds = array<i64: 128, 128>}, {pipeline_mode = #tpu.pipeline_mode<synchronous>, transform_indices = @transform_9, window_bounds = array<i64: 1, 128>}, {transform_indices = @transform_10, window_bounds = array<i64: 2, 128>}]} {
    %c0 = arith.constant 0 : index
    %c0_0 = arith.constant 0 : index
    %0 = vector.load %arg2[%c0, %c0_0] : memref<128x128xf32, #tpu.memory_space<vmem>>, vector<128x128xf32>
    %cst = arith.constant 0.000000e+00 : f32
    %1 = vector.broadcast %cst : f32 to vector<2x128xf32>
    %c0_1 = arith.constant 0 : index
    %c0_2 = arith.constant 0 : index
    %c0_3 = arith.constant 0 : index
    %2 = vector.load %arg1[%c0_1, %c0_2, %c0_3] : memref<8x2x128xf32, #tpu.memory_space<vmem>>, vector<1x2x128xf32>
    %3 = vector.shape_cast %2 : vector<1x2x128xf32> to vector<2x128xf32>
    %4 = vector.extract_strided_slice %3 {offsets = [0, 0], sizes = [2, 64], strides = [1, 1]} : vector<2x128xf32> to vector<2x64xf32>
    %c7 = arith.constant 7 : index
    %c0_4 = arith.constant 0 : index
    %c0_5 = arith.constant 0 : index
    %5 = vector.load %arg1[%c7, %c0_4, %c0_5] : memref<8x2x128xf32, #tpu.memory_space<vmem>>, vector<1x2x128xf32>
    %6 = vector.shape_cast %5 : vector<1x2x128xf32> to vector<2x128xf32>
    %7 = vector.extract_strided_slice %6 {offsets = [0, 64], sizes = [2, 64], strides = [1, 1]} : vector<2x128xf32> to vector<2x64xf32>
    %8 = tpu.concatenate %4, %7 in 1 : vector<2x64xf32>, vector<2x64xf32> -> vector<2x128xf32>
    %cst_6 = arith.constant dense<0.000000e+00> : vector<2x128xf32>
    %9 = tpu.matmul %1, %0, %cst_6 {dimension_numbers = #tpu.dot_dimension_numbers<[1], [0], [0], [1], [0, 0, 1, 1], [], []>} : vector<2x128xf32>, vector<128x128xf32>, vector<2x128xf32> -> vector<2x128xf32>
    %10 = arith.addf %8, %9 : vector<2x128xf32>
    %11 = math.tanh %10 : vector<2x128xf32>
    %12 = vector.extract_strided_slice %11 {offsets = [0, 0], sizes = [2, 64], strides = [1, 1]} : vector<2x128xf32> to vector<2x64xf32>
    %c0_7 = arith.constant 0 : index
    %c0_8 = arith.constant 0 : index
    %13 = vector.load %arg12[%c0_7, %c0_8] : memref<16x128xf32, #tpu.memory_space<vmem>>, vector<2x64xf32>
    tpu.vector_store %arg12[%c0_7, %c0_8], %12 {strides = array<i32>} : memref<16x128xf32, #tpu.memory_space<vmem>>, vector<2x64xf32>,
    %14 = vector.extract_strided_slice %11 {offsets = [0, 64], sizes = [2, 64], strides = [1, 1]} : vector<2x128xf32> to vector<2x64xf32>
    %c14 = arith.constant 14 : index
    %c64 = arith.constant 64 : index
    %15 = vector.load %arg12[%c14, %c64] : memref<16x128xf32, #tpu.memory_space<vmem>>, vector<2x64xf32>
    tpu.vector_store %arg12[%c14, %c64], %14 {strides = array<i32>} : memref<16x128xf32, #tpu.memory_space<vmem>>, vector<2x64xf32>,
    %c1 = arith.constant 1 : index
    %c0_9 = arith.constant 0 : index
    %c0_10 = arith.constant 0 : index
    %16 = vector.load %arg1[%c1, %c0_9, %c0_10] : memref<8x2x128xf32, #tpu.memory_space<vmem>>, vector<1x2x128xf32>
    %17 = vector.shape_cast %16 : vector<1x2x128xf32> to vector<2x128xf32>
    %18 = vector.extract_strided_slice %17 {offsets = [0, 0], sizes = [2, 64], strides = [1, 1]} : vector<2x128xf32> to vector<2x64xf32>
    %c6 = arith.constant 6 : index
    %c0_11 = arith.constant 0 : index
    %c0_12 = arith.constant 0 : index
    %19 = vector.load %arg1[%c6, %c0_11, %c0_12] : memref<8x2x128xf32, #tpu.memory_space<vmem>>, vector<1x2x128xf32>
    %20 = vector.shape_cast %19 : vector<1x2x128xf32> to vector<2x128xf32>
    %21 = vector.extract_strided_slice %20 {offsets = [0, 64], sizes = [2, 64], strides = [1, 1]} : vector<2x128xf32> to vector<2x64xf32>
    %22 = tpu.concatenate %18, %21 in 1 : vector<2x64xf32>, vector<2x64xf32> -> vector<2x128xf32>
    %cst_13 = arith.constant dense<0.000000e+00> : vector<2x128xf32>
    %23 = tpu.matmul %11, %0, %cst_13 {dimension_numbers = #tpu.dot_dimension_numbers<[1], [0], [0], [1], [0, 0, 1, 1], [], []>} : vector<2x128xf32>, vector<128x128xf32>, vector<2x128xf32> -> vector<2x128xf32>
    %24 = arith.addf %22, %23 : vector<2x128xf32>
    %25 = math.tanh %24 : vector<2x128xf32>
    %26 = vector.extract_strided_slice %25 {offsets = [0, 0], sizes = [2, 64], strides = [1, 1]} : vector<2x128xf32> to vector<2x64xf32>
    %c2 = arith.constant 2 : index
    %c0_14 = arith.constant 0 : index
    %27 = vector.load %arg12[%c2, %c0_14] : memref<16x128xf32, #tpu.memory_space<vmem>>, vector<2x64xf32>
    tpu.vector_store %arg12[%c2, %c0_14], %26 {strides = array<i32>} : memref<16x128xf32, #tpu.memory_space<vmem>>, vector<2x64xf32>,
    %28 = vector.extract_strided_slice %25 {offsets = [0, 64], sizes = [2, 64], strides = [1, 1]} : vector<2x128xf32> to vector<2x64xf32>
    %c12 = arith.constant 12 : index
    %c64_15 = arith.constant 64 : index
    %29 = vector.load %arg12[%c12, %c64_15] : memref<16x128xf32, #tpu.memory_space<vmem>>, vector<2x64xf32>
    tpu.vector_store %arg12[%c12, %c64_15], %28 {strides = array<i32>} : memref<16x128xf32, #tpu.memory_space<vmem>>, vector<2x64xf32>,
    %c2_16 = arith.constant 2 : index
    %c0_17 = arith.constant 0 : index
    %c0_18 = arith.constant 0 : index
    %30 = vector.load %arg1[%c2_16, %c0_17, %c0_18] : memref<8x2x128xf32, #tpu.memory_space<vmem>>, vector<1x2x128xf32>
    %31 = vector.shape_cast %30 : vector<1x2x128xf32> to vector<2x128xf32>
    %32 = vector.extract_strided_slice %31 {offsets = [0, 0], sizes = [2, 64], strides = [1, 1]} : vector<2x128xf32> to vector<2x64xf32>
    %c5 = arith.constant 5 : index
    %c0_19 = arith.constant 0 : index
    %c0_20 = arith.constant 0 : index
    %33 = vector.load %arg1[%c5, %c0_19, %c0_20] : memref<8x2x128xf32, #tpu.memory_space<vmem>>, vector<1x2x128xf32>
    %34 = vector.shape_cast %33 : vector<1x2x128xf32> to vector<2x128xf32>
    %35 = vector.extract_strided_slice %34 {offsets = [0, 64], sizes = [2, 64], strides = [1, 1]} : vector<2x128xf32> to vector<2x64xf32>
    %36 = tpu.concatenate %32, %35 in 1 : vector<2x64xf32>, vector<2x64xf32> -> vector<2x128xf32>
    %cst_21 = arith.constant dense<0.000000e+00> : vector<2x128xf32>
    %37 = tpu.matmul %25, %0, %cst_21 {dimension_numbers = #tpu.dot_dimension_numbers<[1], [0], [0], [1], [0, 0, 1, 1], [], []>} : vector<2x128xf32>, vector<128x128xf32>, vector<2x128xf32> -> vector<2x128xf32>
    %38 = arith.addf %36, %37 : vector<2x128xf32>
    %39 = math.tanh %38 : vector<2x128xf32>
    %40 = vector.extract_strided_slice %39 {offsets = [0, 0], sizes = [2, 64], strides = [1, 1]} : vector<2x128xf32> to vector<2x64xf32>
    %c4 = arith.constant 4 : index
    %c0_22 = arith.constant 0 : index
    %41 = vector.load %arg12[%c4, %c0_22] : memref<16x128xf32, #tpu.memory_space<vmem>>, vector<2x64xf32>
    tpu.vector_store %arg12[%c4, %c0_22], %40 {strides = array<i32>} : memref<16x128xf32, #tpu.memory_space<vmem>>, vector<2x64xf32>,
    %42 = vector.extract_strided_slice %39 {offsets = [0, 64], sizes = [2, 64], strides = [1, 1]} : vector<2x128xf32> to vector<2x64xf32>
    %c10 = arith.constant 10 : index
    %c64_23 = arith.constant 64 : index
    %43 = vector.load %arg12[%c10, %c64_23] : memref<16x128xf32, #tpu.memory_space<vmem>>, vector<2x64xf32>
    tpu.vector_store %arg12[%c10, %c64_23], %42 {strides = array<i32>} : memref<16x128xf32, #tpu.memory_space<vmem>>, vector<2x64xf32>,
    %c3 = arith.constant 3 : index
    %c0_24 = arith.constant 0 : index
    %c0_25 = arith.constant 0 : index
    %44 = vector.load %arg1[%c3, %c0_24, %c0_25] : memref<8x2x128xf32, #tpu.memory_space<vmem>>, vector<1x2x128xf32>
    %45 = vector.shape_cast %44 : vector<1x2x128xf32> to vector<2x128xf32>
    %46 = vector.extract_strided_slice %45 {offsets = [0, 0], sizes = [2, 64], strides = [1, 1]} : vector<2x128xf32> to vector<2x64xf32>
    %c4_26 = arith.constant 4 : index
    %c0_27 = arith.constant 0 : index
    %c0_28 = arith.constant 0 : index
    %47 = vector.load %arg1[%c4_26, %c0_27, %c0_28] : memref<8x2x128xf32, #tpu.memory_space<vmem>>, vector<1x2x128xf32>
    %48 = vector.shape_cast %47 : vector<1x2x128xf32> to vector<2x128xf32>
    %49 = vector.extract_strided_slice %48 {offsets = [0, 64], sizes = [2, 64], strides = [1, 1]} : vector<2x128xf32> to vector<2x64xf32>
    %50 = tpu.concatenate %46, %49 in 1 : vector<2x64xf32>, vector<2x64xf32> -> vector<2x128xf32>
    %cst_29 = arith.constant dense<0.000000e+00> : vector<2x128xf32>
    %51 = tpu.matmul %39, %0, %cst_29 {dimension_numbers = #tpu.dot_dimension_numbers<[1], [0], [0], [1], [0, 0, 1, 1], [], []>} : vector<2x128xf32>, vector<128x128xf32>, vector<2x128xf32> -> vector<2x128xf32>
    %52 = arith.addf %50, %51 : vector<2x128xf32>
    %53 = math.tanh %52 : vector<2x128xf32>
    %54 = vector.extract_strided_slice %53 {offsets = [0, 0], sizes = [2, 64], strides = [1, 1]} : vector<2x128xf32> to vector<2x64xf32>
    %c6_30 = arith.constant 6 : index
    %c0_31 = arith.constant 0 : index
    %55 = vector.load %arg12[%c6_30, %c0_31] : memref<16x128xf32, #tpu.memory_space<vmem>>, vector<2x64xf32>
    tpu.vector_store %arg12[%c6_30, %c0_31], %54 {strides = array<i32>} : memref<16x128xf32, #tpu.memory_space<vmem>>, vector<2x64xf32>,
    %56 = vector.extract_strided_slice %53 {offsets = [0, 64], sizes = [2, 64], strides = [1, 1]} : vector<2x128xf32> to vector<2x64xf32>
    %c8 = arith.constant 8 : index
    %c64_32 = arith.constant 64 : index
    %57 = vector.load %arg12[%c8, %c64_32] : memref<16x128xf32, #tpu.memory_space<vmem>>, vector<2x64xf32>
    tpu.vector_store %arg12[%c8, %c64_32], %56 {strides = array<i32>} : memref<16x128xf32, #tpu.memory_space<vmem>>, vector<2x64xf32>,
    %c4_33 = arith.constant 4 : index
    %c0_34 = arith.constant 0 : index
    %c0_35 = arith.constant 0 : index
    %58 = vector.load %arg1[%c4_33, %c0_34, %c0_35] : memref<8x2x128xf32, #tpu.memory_space<vmem>>, vector<1x2x128xf32>
    %59 = vector.shape_cast %58 : vector<1x2x128xf32> to vector<2x128xf32>
    %60 = vector.extract_strided_slice %59 {offsets = [0, 0], sizes = [2, 64], strides = [1, 1]} : vector<2x128xf32> to vector<2x64xf32>
    %c3_36 = arith.constant 3 : index
    %c0_37 = arith.constant 0 : index
    %c0_38 = arith.constant 0 : index
    %61 = vector.load %arg1[%c3_36, %c0_37, %c0_38] : memref<8x2x128xf32, #tpu.memory_space<vmem>>, vector<1x2x128xf32>
    %62 = vector.shape_cast %61 : vector<1x2x128xf32> to vector<2x128xf32>
    %63 = vector.extract_strided_slice %62 {offsets = [0, 64], sizes = [2, 64], strides = [1, 1]} : vector<2x128xf32> to vector<2x64xf32>
    %64 = tpu.concatenate %60, %63 in 1 : vector<2x64xf32>, vector<2x64xf32> -> vector<2x128xf32>
    %cst_39 = arith.constant dense<0.000000e+00> : vector<2x128xf32>
    %65 = tpu.matmul %53, %0, %cst_39 {dimension_numbers = #tpu.dot_dimension_numbers<[1], [0], [0], [1], [0, 0, 1, 1], [], []>} : vector<2x128xf32>, vector<128x128xf32>, vector<2x128xf32> -> vector<2x128xf32>
    %66 = arith.addf %64, %65 : vector<2x128xf32>
    %67 = math.tanh %66 : vector<2x128xf32>
    %68 = vector.extract_strided_slice %67 {offsets = [0, 0], sizes = [2, 64], strides = [1, 1]} : vector<2x128xf32> to vector<2x64xf32>
    %c8_40 = arith.constant 8 : index
    %c0_41 = arith.constant 0 : index
    %69 = vector.load %arg12[%c8_40, %c0_41] : memref<16x128xf32, #tpu.memory_space<vmem>>, vector<2x64xf32>
    tpu.vector_store %arg12[%c8_40, %c0_41], %68 {strides = array<i32>} : memref<16x128xf32, #tpu.memory_space<vmem>>, vector<2x64xf32>,
    %70 = vector.extract_strided_slice %67 {offsets = [0, 64], sizes = [2, 64], strides = [1, 1]} : vector<2x128xf32> to vector<2x64xf32>
    %c6_42 = arith.constant 6 : index
    %c64_43 = arith.constant 64 : index
    %71 = vector.load %arg12[%c6_42, %c64_43] : memref<16x128xf32, #tpu.memory_space<vmem>>, vector<2x64xf32>
    tpu.vector_store %arg12[%c6_42, %c64_43], %70 {strides = array<i32>} : memref<16x128xf32, #tpu.memory_space<vmem>>, vector<2x64xf32>,
    %c5_44 = arith.constant 5 : index
    %c0_45 = arith.constant 0 : index
    %c0_46 = arith.constant 0 : index
    %72 = vector.load %arg1[%c5_44, %c0_45, %c0_46] : memref<8x2x128xf32, #tpu.memory_space<vmem>>, vector<1x2x128xf32>
    %73 = vector.shape_cast %72 : vector<1x2x128xf32> to vector<2x128xf32>
    %74 = vector.extract_strided_slice %73 {offsets = [0, 0], sizes = [2, 64], strides = [1, 1]} : vector<2x128xf32> to vector<2x64xf32>
    %c2_47 = arith.constant 2 : index
    %c0_48 = arith.constant 0 : index
    %c0_49 = arith.constant 0 : index
    %75 = vector.load %arg1[%c2_47, %c0_48, %c0_49] : memref<8x2x128xf32, #tpu.memory_space<vmem>>, vector<1x2x128xf32>
    %76 = vector.shape_cast %75 : vector<1x2x128xf32> to vector<2x128xf32>
    %77 = vector.extract_strided_slice %76 {offsets = [0, 64], sizes = [2, 64], strides = [1, 1]} : vector<2x128xf32> to vector<2x64xf32>
    %78 = tpu.concatenate %74, %77 in 1 : vector<2x64xf32>, vector<2x64xf32> -> vector<2x128xf32>
    %cst_50 = arith.constant dense<0.000000e+00> : vector<2x128xf32>
    %79 = tpu.matmul %67, %0, %cst_50 {dimension_numbers = #tpu.dot_dimension_numbers<[1], [0], [0], [1], [0, 0, 1, 1], [], []>} : vector<2x128xf32>, vector<128x128xf32>, vector<2x128xf32> -> vector<2x128xf32>
    %80 = arith.addf %78, %79 : vector<2x128xf32>
    %81 = math.tanh %80 : vector<2x128xf32>
    %82 = vector.extract_strided_slice %81 {offsets = [0, 0], sizes = [2, 64], strides = [1, 1]} : vector<2x128xf32> to vector<2x64xf32>
    %c10_51 = arith.constant 10 : index
    %c0_52 = arith.constant 0 : index
    %83 = vector.load %arg12[%c10_51, %c0_52] : memref<16x128xf32, #tpu.memory_space<vmem>>, vector<2x64xf32>
    tpu.vector_store %arg12[%c10_51, %c0_52], %82 {strides = array<i32>} : memref<16x128xf32, #tpu.memory_space<vmem>>, vector<2x64xf32>,
    %84 = vector.extract_strided_slice %81 {offsets = [0, 64], sizes = [2, 64], strides = [1, 1]} : vector<2x128xf32> to vector<2x64xf32>
    %c4_53 = arith.constant 4 : index
    %c64_54 = arith.constant 64 : index
    %85 = vector.load %arg12[%c4_53, %c64_54] : memref<16x128xf32, #tpu.memory_space<vmem>>, vector<2x64xf32>
    tpu.vector_store %arg12[%c4_53, %c64_54], %84 {strides = array<i32>} : memref<16x128xf32, #tpu.memory_space<vmem>>, vector<2x64xf32>,
    %c6_55 = arith.constant 6 : index
    %c0_56 = arith.constant 0 : index
    %c0_57 = arith.constant 0 : index
    %86 = vector.load %arg1[%c6_55, %c0_56, %c0_57] : memref<8x2x128xf32, #tpu.memory_space<vmem>>, vector<1x2x128xf32>
    %87 = vector.shape_cast %86 : vector<1x2x128xf32> to vector<2x128xf32>
    %88 = vector.extract_strided_slice %87 {offsets = [0, 0], sizes = [2, 64], strides = [1, 1]} : vector<2x128xf32> to vector<2x64xf32>
    %c1_58 = arith.constant 1 : index
    %c0_59 = arith.constant 0 : index
    %c0_60 = arith.constant 0 : index
    %89 = vector.load %arg1[%c1_58, %c0_59, %c0_60] : memref<8x2x128xf32, #tpu.memory_space<vmem>>, vector<1x2x128xf32>
    %90 = vector.shape_cast %89 : vector<1x2x128xf32> to vector<2x128xf32>
    %91 = vector.extract_strided_slice %90 {offsets = [0, 64], sizes = [2, 64], strides = [1, 1]} : vector<2x128xf32> to vector<2x64xf32>
    %92 = tpu.concatenate %88, %91 in 1 : vector<2x64xf32>, vector<2x64xf32> -> vector<2x128xf32>
    %cst_61 = arith.constant dense<0.000000e+00> : vector<2x128xf32>
    %93 = tpu.matmul %81, %0, %cst_61 {dimension_numbers = #tpu.dot_dimension_numbers<[1], [0], [0], [1], [0, 0, 1, 1], [], []>} : vector<2x128xf32>, vector<128x128xf32>, vector<2x128xf32> -> vector<2x128xf32>
    %94 = arith.addf %92, %93 : vector<2x128xf32>
    %95 = math.tanh %94 : vector<2x128xf32>
    %96 = vector.extract_strided_slice %95 {offsets = [0, 0], sizes = [2, 64], strides = [1, 1]} : vector<2x128xf32> to vector<2x64xf32>
    %c12_62 = arith.constant 12 : index
    %c0_63 = arith.constant 0 : index
    %97 = vector.load %arg12[%c12_62, %c0_63] : memref<16x128xf32, #tpu.memory_space<vmem>>, vector<2x64xf32>
    tpu.vector_store %arg12[%c12_62, %c0_63], %96 {strides = array<i32>} : memref<16x128xf32, #tpu.memory_space<vmem>>, vector<2x64xf32>,
    %98 = vector.extract_strided_slice %95 {offsets = [0, 64], sizes = [2, 64], strides = [1, 1]} : vector<2x128xf32> to vector<2x64xf32>
    %c2_64 = arith.constant 2 : index
    %c64_65 = arith.constant 64 : index
    %99 = vector.load %arg12[%c2_64, %c64_65] : memref<16x128xf32, #tpu.memory_space<vmem>>, vector<2x64xf32>
    tpu.vector_store %arg12[%c2_64, %c64_65], %98 {strides = array<i32>} : memref<16x128xf32, #tpu.memory_space<vmem>>, vector<2x64xf32>,
    %c7_66 = arith.constant 7 : index
    %c0_67 = arith.constant 0 : index
    %c0_68 = arith.constant 0 : index
    %100 = vector.load %arg1[%c7_66, %c0_67, %c0_68] : memref<8x2x128xf32, #tpu.memory_space<vmem>>, vector<1x2x128xf32>
    %101 = vector.shape_cast %100 : vector<1x2x128xf32> to vector<2x128xf32>
    %102 = vector.extract_strided_slice %101 {offsets = [0, 0], sizes = [2, 64], strides = [1, 1]} : vector<2x128xf32> to vector<2x64xf32>
    %c0_69 = arith.constant 0 : index
    %c0_70 = arith.constant 0 : index
    %c0_71 = arith.constant 0 : index
    %103 = vector.load %arg1[%c0_69, %c0_70, %c0_71] : memref<8x2x128xf32, #tpu.memory_space<vmem>>, vector<1x2x128xf32>
    %104 = vector.shape_cast %103 : vector<1x2x128xf32> to vector<2x128xf32>
    %105 = vector.extract_strided_slice %104 {offsets = [0, 64], sizes = [2, 64], strides = [1, 1]} : vector<2x128xf32> to vector<2x64xf32>
    %106 = tpu.concatenate %102, %105 in 1 : vector<2x64xf32>, vector<2x64xf32> -> vector<2x128xf32>
    %cst_72 = arith.constant dense<0.000000e+00> : vector<2x128xf32>
    %107 = tpu.matmul %95, %0, %cst_72 {dimension_numbers = #tpu.dot_dimension_numbers<[1], [0], [0], [1], [0, 0, 1, 1], [], []>} : vector<2x128xf32>, vector<128x128xf32>, vector<2x128xf32> -> vector<2x128xf32>
    %108 = arith.addf %106, %107 : vector<2x128xf32>
    %109 = math.tanh %108 : vector<2x128xf32>
    %110 = vector.extract_strided_slice %109 {offsets = [0, 0], sizes = [2, 64], strides = [1, 1]} : vector<2x128xf32> to vector<2x64xf32>
    %c14_73 = arith.constant 14 : index
    %c0_74 = arith.constant 0 : index
    %111 = vector.load %arg12[%c14_73, %c0_74] : memref<16x128xf32, #tpu.memory_space<vmem>>, vector<2x64xf32>
    tpu.vector_store %arg12[%c14_73, %c0_74], %110 {strides = array<i32>} : memref<16x128xf32, #tpu.memory_space<vmem>>, vector<2x64xf32>,
    %112 = vector.extract_strided_slice %109 {offsets = [0, 64], sizes = [2, 64], strides = [1, 1]} : vector<2x128xf32> to vector<2x64xf32>
    %c0_75 = arith.constant 0 : index
    %c64_76 = arith.constant 64 : index
    %113 = vector.load %arg12[%c0_75, %c64_76] : memref<16x128xf32, #tpu.memory_space<vmem>>, vector<2x64xf32>
    tpu.vector_store %arg12[%c0_75, %c64_76], %112 {strides = array<i32>} : memref<16x128xf32, #tpu.memory_space<vmem>>, vector<2x64xf32>,
    %c0_77 = arith.constant 0 : index
    %c0_78 = arith.constant 0 : index
    %114 = vector.load %arg12[%c0_77, %c0_78] : memref<16x128xf32, #tpu.memory_space<vmem>>, vector<16x128xf32>
    %c0_79 = arith.constant 0 : index
    %c0_80 = arith.constant 0 : index
    %115 = vector.load %arg3[%c0_79, %c0_80] : memref<128x128xf32, #tpu.memory_space<vmem>>, vector<128x128xf32>
    %cst_81 = arith.constant dense<0.000000e+00> : vector<16x128xf32>
    %116 = tpu.matmul %114, %115, %cst_81 {dimension_numbers = #tpu.dot_dimension_numbers<[1], [0], [0], [1], [0, 0, 1, 1], [], []>} : vector<16x128xf32>, vector<128x128xf32>, vector<16x128xf32> -> vector<16x128xf32>
    %c0_82 = arith.constant 0 : index
    %c0_83 = arith.constant 0 : index
    %117 = vector.load %arg4[%c0_82, %c0_83] : memref<1x128xf32, #tpu.memory_space<vmem>>, vector<1x128xf32>
    %118 = vector.broadcast %117 : vector<1x128xf32> to vector<16x128xf32>
    %119 = arith.addf %116, %118 : vector<16x128xf32>
    %c0_84 = arith.constant 0 : index
    %c0_85 = arith.constant 0 : index
    %120 = vector.load %arg13[%c0_84, %c0_85] : memref<16x128xf32, #tpu.memory_space<vmem>>, vector<16x128xf32>
    tpu.vector_store %arg13[%c0_84, %c0_85], %119 {strides = array<i32>} : memref<16x128xf32, #tpu.memory_space<vmem>>, vector<16x128xf32>,
    %c0_86 = arith.constant 0 : index
    %c0_87 = arith.constant 0 : index
    %121 = vector.load %arg5[%c0_86, %c0_87] : memref<128x128xf32, #tpu.memory_space<vmem>>, vector<128x128xf32>
    %cst_88 = arith.constant 0.000000e+00 : f32
    %122 = vector.broadcast %cst_88 : f32 to vector<2x128xf32>
    %c0_89 = arith.constant 0 : index
    %c0_90 = arith.constant 0 : index
    %123 = vector.load %arg13[%c0_89, %c0_90] : memref<16x128xf32, #tpu.memory_space<vmem>>, vector<2x128xf32>
    %124 = vector.extract_strided_slice %123 {offsets = [0, 0], sizes = [2, 64], strides = [1, 1]} : vector<2x128xf32> to vector<2x64xf32>
    %c14_91 = arith.constant 14 : index
    %c0_92 = arith.constant 0 : index
    %125 = vector.load %arg13[%c14_91, %c0_92] : memref<16x128xf32, #tpu.memory_space<vmem>>, vector<2x128xf32>
    %126 = vector.extract_strided_slice %125 {offsets = [0, 64], sizes = [2, 64], strides = [1, 1]} : vector<2x128xf32> to vector<2x64xf32>
    %127 = tpu.concatenate %124, %126 in 1 : vector<2x64xf32>, vector<2x64xf32> -> vector<2x128xf32>
    %cst_93 = arith.constant dense<0.000000e+00> : vector<2x128xf32>
    %128 = tpu.matmul %122, %121, %cst_93 {dimension_numbers = #tpu.dot_dimension_numbers<[1], [0], [0], [1], [0, 0, 1, 1], [], []>} : vector<2x128xf32>, vector<128x128xf32>, vector<2x128xf32> -> vector<2x128xf32>
    %129 = arith.addf %127, %128 : vector<2x128xf32>
    %130 = math.tanh %129 : vector<2x128xf32>
    %131 = vector.extract_strided_slice %130 {offsets = [0, 0], sizes = [2, 64], strides = [1, 1]} : vector<2x128xf32> to vector<2x64xf32>
    %c0_94 = arith.constant 0 : index
    %c0_95 = arith.constant 0 : index
    %132 = vector.load %arg12[%c0_94, %c0_95] : memref<16x128xf32, #tpu.memory_space<vmem>>, vector<2x64xf32>
    tpu.vector_store %arg12[%c0_94, %c0_95], %131 {strides = array<i32>} : memref<16x128xf32, #tpu.memory_space<vmem>>, vector<2x64xf32>,
    %133 = vector.extract_strided_slice %130 {offsets = [0, 64], sizes = [2, 64], strides = [1, 1]} : vector<2x128xf32> to vector<2x64xf32>
    %c14_96 = arith.constant 14 : index
    %c64_97 = arith.constant 64 : index
    %134 = vector.load %arg12[%c14_96, %c64_97] : memref<16x128xf32, #tpu.memory_space<vmem>>, vector<2x64xf32>
    tpu.vector_store %arg12[%c14_96, %c64_97], %133 {strides = array<i32>} : memref<16x128xf32, #tpu.memory_space<vmem>>, vector<2x64xf32>,
    %c2_98 = arith.constant 2 : index
    %c0_99 = arith.constant 0 : index
    %135 = vector.load %arg13[%c2_98, %c0_99] : memref<16x128xf32, #tpu.memory_space<vmem>>, vector<2x128xf32>
    %136 = vector.extract_strided_slice %135 {offsets = [0, 0], sizes = [2, 64], strides = [1, 1]} : vector<2x128xf32> to vector<2x64xf32>
    %c12_100 = arith.constant 12 : index
    %c0_101 = arith.constant 0 : index
    %137 = vector.load %arg13[%c12_100, %c0_101] : memref<16x128xf32, #tpu.memory_space<vmem>>, vector<2x128xf32>
    %138 = vector.extract_strided_slice %137 {offsets = [0, 64], sizes = [2, 64], strides = [1, 1]} : vector<2x128xf32> to vector<2x64xf32>
    %139 = tpu.concatenate %136, %138 in 1 : vector<2x64xf32>, vector<2x64xf32> -> vector<2x128xf32>
    %cst_102 = arith.constant dense<0.000000e+00> : vector<2x128xf32>
    %140 = tpu.matmul %130, %121, %cst_102 {dimension_numbers = #tpu.dot_dimension_numbers<[1], [0], [0], [1], [0, 0, 1, 1], [], []>} : vector<2x128xf32>, vector<128x128xf32>, vector<2x128xf32> -> vector<2x128xf32>
    %141 = arith.addf %139, %140 : vector<2x128xf32>
    %142 = math.tanh %141 : vector<2x128xf32>
    %143 = vector.extract_strided_slice %142 {offsets = [0, 0], sizes = [2, 64], strides = [1, 1]} : vector<2x128xf32> to vector<2x64xf32>
    %c2_103 = arith.constant 2 : index
    %c0_104 = arith.constant 0 : index
    %144 = vector.load %arg12[%c2_103, %c0_104] : memref<16x128xf32, #tpu.memory_space<vmem>>, vector<2x64xf32>
    tpu.vector_store %arg12[%c2_103, %c0_104], %143 {strides = array<i32>} : memref<16x128xf32, #tpu.memory_space<vmem>>, vector<2x64xf32>,
    %145 = vector.extract_strided_slice %142 {offsets = [0, 64], sizes = [2, 64], strides = [1, 1]} : vector<2x128xf32> to vector<2x64xf32>
    %c12_105 = arith.constant 12 : index
    %c64_106 = arith.constant 64 : index
    %146 = vector.load %arg12[%c12_105, %c64_106] : memref<16x128xf32, #tpu.memory_space<vmem>>, vector<2x64xf32>
    tpu.vector_store %arg12[%c12_105, %c64_106], %145 {strides = array<i32>} : memref<16x128xf32, #tpu.memory_space<vmem>>, vector<2x64xf32>,
    %c4_107 = arith.constant 4 : index
    %c0_108 = arith.constant 0 : index
    %147 = vector.load %arg13[%c4_107, %c0_108] : memref<16x128xf32, #tpu.memory_space<vmem>>, vector<2x128xf32>
    %148 = vector.extract_strided_slice %147 {offsets = [0, 0], sizes = [2, 64], strides = [1, 1]} : vector<2x128xf32> to vector<2x64xf32>
    %c10_109 = arith.constant 10 : index
    %c0_110 = arith.constant 0 : index
    %149 = vector.load %arg13[%c10_109, %c0_110] : memref<16x128xf32, #tpu.memory_space<vmem>>, vector<2x128xf32>
    %150 = vector.extract_strided_slice %149 {offsets = [0, 64], sizes = [2, 64], strides = [1, 1]} : vector<2x128xf32> to vector<2x64xf32>
    %151 = tpu.concatenate %148, %150 in 1 : vector<2x64xf32>, vector<2x64xf32> -> vector<2x128xf32>
    %cst_111 = arith.constant dense<0.000000e+00> : vector<2x128xf32>
    %152 = tpu.matmul %142, %121, %cst_111 {dimension_numbers = #tpu.dot_dimension_numbers<[1], [0], [0], [1], [0, 0, 1, 1], [], []>} : vector<2x128xf32>, vector<128x128xf32>, vector<2x128xf32> -> vector<2x128xf32>
    %153 = arith.addf %151, %152 : vector<2x128xf32>
    %154 = math.tanh %153 : vector<2x128xf32>
    %155 = vector.extract_strided_slice %154 {offsets = [0, 0], sizes = [2, 64], strides = [1, 1]} : vector<2x128xf32> to vector<2x64xf32>
    %c4_112 = arith.constant 4 : index
    %c0_113 = arith.constant 0 : index
    %156 = vector.load %arg12[%c4_112, %c0_113] : memref<16x128xf32, #tpu.memory_space<vmem>>, vector<2x64xf32>
    tpu.vector_store %arg12[%c4_112, %c0_113], %155 {strides = array<i32>} : memref<16x128xf32, #tpu.memory_space<vmem>>, vector<2x64xf32>,
    %157 = vector.extract_strided_slice %154 {offsets = [0, 64], sizes = [2, 64], strides = [1, 1]} : vector<2x128xf32> to vector<2x64xf32>
    %c10_114 = arith.constant 10 : index
    %c64_115 = arith.constant 64 : index
    %158 = vector.load %arg12[%c10_114, %c64_115] : memref<16x128xf32, #tpu.memory_space<vmem>>, vector<2x64xf32>
    tpu.vector_store %arg12[%c10_114, %c64_115], %157 {strides = array<i32>} : memref<16x128xf32, #tpu.memory_space<vmem>>, vector<2x64xf32>,
    %c6_116 = arith.constant 6 : index
    %c0_117 = arith.constant 0 : index
    %159 = vector.load %arg13[%c6_116, %c0_117] : memref<16x128xf32, #tpu.memory_space<vmem>>, vector<2x128xf32>
    %160 = vector.extract_strided_slice %159 {offsets = [0, 0], sizes = [2, 64], strides = [1, 1]} : vector<2x128xf32> to vector<2x64xf32>
    %c8_118 = arith.constant 8 : index
    %c0_119 = arith.constant 0 : index
    %161 = vector.load %arg13[%c8_118, %c0_119] : memref<16x128xf32, #tpu.memory_space<vmem>>, vector<2x128xf32>
    %162 = vector.extract_strided_slice %161 {offsets = [0, 64], sizes = [2, 64], strides = [1, 1]} : vector<2x128xf32> to vector<2x64xf32>
    %163 = tpu.concatenate %160, %162 in 1 : vector<2x64xf32>, vector<2x64xf32> -> vector<2x128xf32>
    %cst_120 = arith.constant dense<0.000000e+00> : vector<2x128xf32>
    %164 = tpu.matmul %154, %121, %cst_120 {dimension_numbers = #tpu.dot_dimension_numbers<[1], [0], [0], [1], [0, 0, 1, 1], [], []>} : vector<2x128xf32>, vector<128x128xf32>, vector<2x128xf32> -> vector<2x128xf32>
    %165 = arith.addf %163, %164 : vector<2x128xf32>
    %166 = math.tanh %165 : vector<2x128xf32>
    %167 = vector.extract_strided_slice %166 {offsets = [0, 0], sizes = [2, 64], strides = [1, 1]} : vector<2x128xf32> to vector<2x64xf32>
    %c6_121 = arith.constant 6 : index
    %c0_122 = arith.constant 0 : index
    %168 = vector.load %arg12[%c6_121, %c0_122] : memref<16x128xf32, #tpu.memory_space<vmem>>, vector<2x64xf32>
    tpu.vector_store %arg12[%c6_121, %c0_122], %167 {strides = array<i32>} : memref<16x128xf32, #tpu.memory_space<vmem>>, vector<2x64xf32>,
    %169 = vector.extract_strided_slice %166 {offsets = [0, 64], sizes = [2, 64], strides = [1, 1]} : vector<2x128xf32> to vector<2x64xf32>
    %c8_123 = arith.constant 8 : index
    %c64_124 = arith.constant 64 : index
    %170 = vector.load %arg12[%c8_123, %c64_124] : memref<16x128xf32, #tpu.memory_space<vmem>>, vector<2x64xf32>
    tpu.vector_store %arg12[%c8_123, %c64_124], %169 {strides = array<i32>} : memref<16x128xf32, #tpu.memory_space<vmem>>, vector<2x64xf32>,
    %c8_125 = arith.constant 8 : index
    %c0_126 = arith.constant 0 : index
    %171 = vector.load %arg13[%c8_125, %c0_126] : memref<16x128xf32, #tpu.memory_space<vmem>>, vector<2x128xf32>
    %172 = vector.extract_strided_slice %171 {offsets = [0, 0], sizes = [2, 64], strides = [1, 1]} : vector<2x128xf32> to vector<2x64xf32>
    %c6_127 = arith.constant 6 : index
    %c0_128 = arith.constant 0 : index
    %173 = vector.load %arg13[%c6_127, %c0_128] : memref<16x128xf32, #tpu.memory_space<vmem>>, vector<2x128xf32>
    %174 = vector.extract_strided_slice %173 {offsets = [0, 64], sizes = [2, 64], strides = [1, 1]} : vector<2x128xf32> to vector<2x64xf32>
    %175 = tpu.concatenate %172, %174 in 1 : vector<2x64xf32>, vector<2x64xf32> -> vector<2x128xf32>
    %cst_129 = arith.constant dense<0.000000e+00> : vector<2x128xf32>
    %176 = tpu.matmul %166, %121, %cst_129 {dimension_numbers = #tpu.dot_dimension_numbers<[1], [0], [0], [1], [0, 0, 1, 1], [], []>} : vector<2x128xf32>, vector<128x128xf32>, vector<2x128xf32> -> vector<2x128xf32>
    %177 = arith.addf %175, %176 : vector<2x128xf32>
    %178 = math.tanh %177 : vector<2x128xf32>
    %179 = vector.extract_strided_slice %178 {offsets = [0, 0], sizes = [2, 64], strides = [1, 1]} : vector<2x128xf32> to vector<2x64xf32>
    %c8_130 = arith.constant 8 : index
    %c0_131 = arith.constant 0 : index
    %180 = vector.load %arg12[%c8_130, %c0_131] : memref<16x128xf32, #tpu.memory_space<vmem>>, vector<2x64xf32>
    tpu.vector_store %arg12[%c8_130, %c0_131], %179 {strides = array<i32>} : memref<16x128xf32, #tpu.memory_space<vmem>>, vector<2x64xf32>,
    %181 = vector.extract_strided_slice %178 {offsets = [0, 64], sizes = [2, 64], strides = [1, 1]} : vector<2x128xf32> to vector<2x64xf32>
    %c6_132 = arith.constant 6 : index
    %c64_133 = arith.constant 64 : index
    %182 = vector.load %arg12[%c6_132, %c64_133] : memref<16x128xf32, #tpu.memory_space<vmem>>, vector<2x64xf32>
    tpu.vector_store %arg12[%c6_132, %c64_133], %181 {strides = array<i32>} : memref<16x128xf32, #tpu.memory_space<vmem>>, vector<2x64xf32>,
    %c10_134 = arith.constant 10 : index
    %c0_135 = arith.constant 0 : index
    %183 = vector.load %arg13[%c10_134, %c0_135] : memref<16x128xf32, #tpu.memory_space<vmem>>, vector<2x128xf32>
    %184 = vector.extract_strided_slice %183 {offsets = [0, 0], sizes = [2, 64], strides = [1, 1]} : vector<2x128xf32> to vector<2x64xf32>
    %c4_136 = arith.constant 4 : index
    %c0_137 = arith.constant 0 : index
    %185 = vector.load %arg13[%c4_136, %c0_137] : memref<16x128xf32, #tpu.memory_space<vmem>>, vector<2x128xf32>
    %186 = vector.extract_strided_slice %185 {offsets = [0, 64], sizes = [2, 64], strides = [1, 1]} : vector<2x128xf32> to vector<2x64xf32>
    %187 = tpu.concatenate %184, %186 in 1 : vector<2x64xf32>, vector<2x64xf32> -> vector<2x128xf32>
    %cst_138 = arith.constant dense<0.000000e+00> : vector<2x128xf32>
    %188 = tpu.matmul %178, %121, %cst_138 {dimension_numbers = #tpu.dot_dimension_numbers<[1], [0], [0], [1], [0, 0, 1, 1], [], []>} : vector<2x128xf32>, vector<128x128xf32>, vector<2x128xf32> -> vector<2x128xf32>
    %189 = arith.addf %187, %188 : vector<2x128xf32>
    %190 = math.tanh %189 : vector<2x128xf32>
    %191 = vector.extract_strided_slice %190 {offsets = [0, 0], sizes = [2, 64], strides = [1, 1]} : vector<2x128xf32> to vector<2x64xf32>
    %c10_139 = arith.constant 10 : index
    %c0_140 = arith.constant 0 : index
    %192 = vector.load %arg12[%c10_139, %c0_140] : memref<16x128xf32, #tpu.memory_space<vmem>>, vector<2x64xf32>
    tpu.vector_store %arg12[%c10_139, %c0_140], %191 {strides = array<i32>} : memref<16x128xf32, #tpu.memory_space<vmem>>, vector<2x64xf32>,
    %193 = vector.extract_strided_slice %190 {offsets = [0, 64], sizes = [2, 64], strides = [1, 1]} : vector<2x128xf32> to vector<2x64xf32>
    %c4_141 = arith.constant 4 : index
    %c64_142 = arith.constant 64 : index
    %194 = vector.load %arg12[%c4_141, %c64_142] : memref<16x128xf32, #tpu.memory_space<vmem>>, vector<2x64xf32>
    tpu.vector_store %arg12[%c4_141, %c64_142], %193 {strides = array<i32>} : memref<16x128xf32, #tpu.memory_space<vmem>>, vector<2x64xf32>,
    %c12_143 = arith.constant 12 : index
    %c0_144 = arith.constant 0 : index
    %195 = vector.load %arg13[%c12_143, %c0_144] : memref<16x128xf32, #tpu.memory_space<vmem>>, vector<2x128xf32>
    %196 = vector.extract_strided_slice %195 {offsets = [0, 0], sizes = [2, 64], strides = [1, 1]} : vector<2x128xf32> to vector<2x64xf32>
    %c2_145 = arith.constant 2 : index
    %c0_146 = arith.constant 0 : index
    %197 = vector.load %arg13[%c2_145, %c0_146] : memref<16x128xf32, #tpu.memory_space<vmem>>, vector<2x128xf32>
    %198 = vector.extract_strided_slice %197 {offsets = [0, 64], sizes = [2, 64], strides = [1, 1]} : vector<2x128xf32> to vector<2x64xf32>
    %199 = tpu.concatenate %196, %198 in 1 : vector<2x64xf32>, vector<2x64xf32> -> vector<2x128xf32>
    %cst_147 = arith.constant dense<0.000000e+00> : vector<2x128xf32>
    %200 = tpu.matmul %190, %121, %cst_147 {dimension_numbers = #tpu.dot_dimension_numbers<[1], [0], [0], [1], [0, 0, 1, 1], [], []>} : vector<2x128xf32>, vector<128x128xf32>, vector<2x128xf32> -> vector<2x128xf32>
    %201 = arith.addf %199, %200 : vector<2x128xf32>
    %202 = math.tanh %201 : vector<2x128xf32>
    %203 = vector.extract_strided_slice %202 {offsets = [0, 0], sizes = [2, 64], strides = [1, 1]} : vector<2x128xf32> to vector<2x64xf32>
    %c12_148 = arith.constant 12 : index
    %c0_149 = arith.constant 0 : index
    %204 = vector.load %arg12[%c12_148, %c0_149] : memref<16x128xf32, #tpu.memory_space<vmem>>, vector<2x64xf32>
    tpu.vector_store %arg12[%c12_148, %c0_149], %203 {strides = array<i32>} : memref<16x128xf32, #tpu.memory_space<vmem>>, vector<2x64xf32>,
    %205 = vector.extract_strided_slice %202 {offsets = [0, 64], sizes = [2, 64], strides = [1, 1]} : vector<2x128xf32> to vector<2x64xf32>
    %c2_150 = arith.constant 2 : index
    %c64_151 = arith.constant 64 : index
    %206 = vector.load %arg12[%c2_150, %c64_151] : memref<16x128xf32, #tpu.memory_space<vmem>>, vector<2x64xf32>
    tpu.vector_store %arg12[%c2_150, %c64_151], %205 {strides = array<i32>} : memref<16x128xf32, #tpu.memory_space<vmem>>, vector<2x64xf32>,
    %c14_152 = arith.constant 14 : index
    %c0_153 = arith.constant 0 : index
    %207 = vector.load %arg13[%c14_152, %c0_153] : memref<16x128xf32, #tpu.memory_space<vmem>>, vector<2x128xf32>
    %208 = vector.extract_strided_slice %207 {offsets = [0, 0], sizes = [2, 64], strides = [1, 1]} : vector<2x128xf32> to vector<2x64xf32>
    %c0_154 = arith.constant 0 : index
    %c0_155 = arith.constant 0 : index
    %209 = vector.load %arg13[%c0_154, %c0_155] : memref<16x128xf32, #tpu.memory_space<vmem>>, vector<2x128xf32>
    %210 = vector.extract_strided_slice %209 {offsets = [0, 64], sizes = [2, 64], strides = [1, 1]} : vector<2x128xf32> to vector<2x64xf32>
    %211 = tpu.concatenate %208, %210 in 1 : vector<2x64xf32>, vector<2x64xf32> -> vector<2x128xf32>
    %cst_156 = arith.constant dense<0.000000e+00> : vector<2x128xf32>
    %212 = tpu.matmul %202, %121, %cst_156 {dimension_numbers = #tpu.dot_dimension_numbers<[1], [0], [0], [1], [0, 0, 1, 1], [], []>} : vector<2x128xf32>, vector<128x128xf32>, vector<2x128xf32> -> vector<2x128xf32>
    %213 = arith.addf %211, %212 : vector<2x128xf32>
    %214 = math.tanh %213 : vector<2x128xf32>
    %215 = vector.extract_strided_slice %214 {offsets = [0, 0], sizes = [2, 64], strides = [1, 1]} : vector<2x128xf32> to vector<2x64xf32>
    %c14_157 = arith.constant 14 : index
    %c0_158 = arith.constant 0 : index
    %216 = vector.load %arg12[%c14_157, %c0_158] : memref<16x128xf32, #tpu.memory_space<vmem>>, vector<2x64xf32>
    tpu.vector_store %arg12[%c14_157, %c0_158], %215 {strides = array<i32>} : memref<16x128xf32, #tpu.memory_space<vmem>>, vector<2x64xf32>,
    %217 = vector.extract_strided_slice %214 {offsets = [0, 64], sizes = [2, 64], strides = [1, 1]} : vector<2x128xf32> to vector<2x64xf32>
    %c0_159 = arith.constant 0 : index
    %c64_160 = arith.constant 64 : index
    %218 = vector.load %arg12[%c0_159, %c64_160] : memref<16x128xf32, #tpu.memory_space<vmem>>, vector<2x64xf32>
    tpu.vector_store %arg12[%c0_159, %c64_160], %217 {strides = array<i32>} : memref<16x128xf32, #tpu.memory_space<vmem>>, vector<2x64xf32>,
    %c0_161 = arith.constant 0 : index
    %c0_162 = arith.constant 0 : index
    %219 = vector.load %arg12[%c0_161, %c0_162] : memref<16x128xf32, #tpu.memory_space<vmem>>, vector<16x128xf32>
    %c0_163 = arith.constant 0 : index
    %c0_164 = arith.constant 0 : index
    %220 = vector.load %arg6[%c0_163, %c0_164] : memref<128x128xf32, #tpu.memory_space<vmem>>, vector<128x128xf32>
    %cst_165 = arith.constant dense<0.000000e+00> : vector<16x128xf32>
    %221 = tpu.matmul %219, %220, %cst_165 {dimension_numbers = #tpu.dot_dimension_numbers<[1], [0], [0], [1], [0, 0, 1, 1], [], []>} : vector<16x128xf32>, vector<128x128xf32>, vector<16x128xf32> -> vector<16x128xf32>
    %c0_166 = arith.constant 0 : index
    %c0_167 = arith.constant 0 : index
    %222 = vector.load %arg7[%c0_166, %c0_167] : memref<1x128xf32, #tpu.memory_space<vmem>>, vector<1x128xf32>
    %223 = vector.broadcast %222 : vector<1x128xf32> to vector<16x128xf32>
    %224 = arith.addf %221, %223 : vector<16x128xf32>
    %c0_168 = arith.constant 0 : index
    %c0_169 = arith.constant 0 : index
    %225 = vector.load %arg13[%c0_168, %c0_169] : memref<16x128xf32, #tpu.memory_space<vmem>>, vector<16x128xf32>
    tpu.vector_store %arg13[%c0_168, %c0_169], %224 {strides = array<i32>} : memref<16x128xf32, #tpu.memory_space<vmem>>, vector<16x128xf32>,
    %c0_170 = arith.constant 0 : index
    %c0_171 = arith.constant 0 : index
    %226 = vector.load %arg8[%c0_170, %c0_171] : memref<128x128xf32, #tpu.memory_space<vmem>>, vector<128x128xf32>
    %cst_172 = arith.constant 0.000000e+00 : f32
    %227 = vector.broadcast %cst_172 : f32 to vector<2x128xf32>
    %c0_173 = arith.constant 0 : index
    %c0_174 = arith.constant 0 : index
    %228 = vector.load %arg13[%c0_173, %c0_174] : memref<16x128xf32, #tpu.memory_space<vmem>>, vector<2x128xf32>
    %229 = vector.extract_strided_slice %228 {offsets = [0, 0], sizes = [2, 64], strides = [1, 1]} : vector<2x128xf32> to vector<2x64xf32>
    %c14_175 = arith.constant 14 : index
    %c0_176 = arith.constant 0 : index
    %230 = vector.load %arg13[%c14_175, %c0_176] : memref<16x128xf32, #tpu.memory_space<vmem>>, vector<2x128xf32>
    %231 = vector.extract_strided_slice %230 {offsets = [0, 64], sizes = [2, 64], strides = [1, 1]} : vector<2x128xf32> to vector<2x64xf32>
    %232 = tpu.concatenate %229, %231 in 1 : vector<2x64xf32>, vector<2x64xf32> -> vector<2x128xf32>
    %cst_177 = arith.constant dense<0.000000e+00> : vector<2x128xf32>
    %233 = tpu.matmul %227, %226, %cst_177 {dimension_numbers = #tpu.dot_dimension_numbers<[1], [0], [0], [1], [0, 0, 1, 1], [], []>} : vector<2x128xf32>, vector<128x128xf32>, vector<2x128xf32> -> vector<2x128xf32>
    %234 = arith.addf %232, %233 : vector<2x128xf32>
    %235 = math.tanh %234 : vector<2x128xf32>
    %236 = vector.extract_strided_slice %235 {offsets = [0, 0], sizes = [2, 64], strides = [1, 1]} : vector<2x128xf32> to vector<2x64xf32>
    %c0_178 = arith.constant 0 : index
    %c0_179 = arith.constant 0 : index
    %237 = vector.load %arg12[%c0_178, %c0_179] : memref<16x128xf32, #tpu.memory_space<vmem>>, vector<2x64xf32>
    tpu.vector_store %arg12[%c0_178, %c0_179], %236 {strides = array<i32>} : memref<16x128xf32, #tpu.memory_space<vmem>>, vector<2x64xf32>,
    %238 = vector.extract_strided_slice %235 {offsets = [0, 64], sizes = [2, 64], strides = [1, 1]} : vector<2x128xf32> to vector<2x64xf32>
    %c14_180 = arith.constant 14 : index
    %c64_181 = arith.constant 64 : index
    %239 = vector.load %arg12[%c14_180, %c64_181] : memref<16x128xf32, #tpu.memory_space<vmem>>, vector<2x64xf32>
    tpu.vector_store %arg12[%c14_180, %c64_181], %238 {strides = array<i32>} : memref<16x128xf32, #tpu.memory_space<vmem>>, vector<2x64xf32>,
    %c2_182 = arith.constant 2 : index
    %c0_183 = arith.constant 0 : index
    %240 = vector.load %arg13[%c2_182, %c0_183] : memref<16x128xf32, #tpu.memory_space<vmem>>, vector<2x128xf32>
    %241 = vector.extract_strided_slice %240 {offsets = [0, 0], sizes = [2, 64], strides = [1, 1]} : vector<2x128xf32> to vector<2x64xf32>
    %c12_184 = arith.constant 12 : index
    %c0_185 = arith.constant 0 : index
    %242 = vector.load %arg13[%c12_184, %c0_185] : memref<16x128xf32, #tpu.memory_space<vmem>>, vector<2x128xf32>
    %243 = vector.extract_strided_slice %242 {offsets = [0, 64], sizes = [2, 64], strides = [1, 1]} : vector<2x128xf32> to vector<2x64xf32>
    %244 = tpu.concatenate %241, %243 in 1 : vector<2x64xf32>, vector<2x64xf32> -> vector<2x128xf32>
    %cst_186 = arith.constant dense<0.000000e+00> : vector<2x128xf32>
    %245 = tpu.matmul %235, %226, %cst_186 {dimension_numbers = #tpu.dot_dimension_numbers<[1], [0], [0], [1], [0, 0, 1, 1], [], []>} : vector<2x128xf32>, vector<128x128xf32>, vector<2x128xf32> -> vector<2x128xf32>
    %246 = arith.addf %244, %245 : vector<2x128xf32>
    %247 = math.tanh %246 : vector<2x128xf32>
    %248 = vector.extract_strided_slice %247 {offsets = [0, 0], sizes = [2, 64], strides = [1, 1]} : vector<2x128xf32> to vector<2x64xf32>
    %c2_187 = arith.constant 2 : index
    %c0_188 = arith.constant 0 : index
    %249 = vector.load %arg12[%c2_187, %c0_188] : memref<16x128xf32, #tpu.memory_space<vmem>>, vector<2x64xf32>
    tpu.vector_store %arg12[%c2_187, %c0_188], %248 {strides = array<i32>} : memref<16x128xf32, #tpu.memory_space<vmem>>, vector<2x64xf32>,
    %250 = vector.extract_strided_slice %247 {offsets = [0, 64], sizes = [2, 64], strides = [1, 1]} : vector<2x128xf32> to vector<2x64xf32>
    %c12_189 = arith.constant 12 : index
    %c64_190 = arith.constant 64 : index
    %251 = vector.load %arg12[%c12_189, %c64_190] : memref<16x128xf32, #tpu.memory_space<vmem>>, vector<2x64xf32>
    tpu.vector_store %arg12[%c12_189, %c64_190], %250 {strides = array<i32>} : memref<16x128xf32, #tpu.memory_space<vmem>>, vector<2x64xf32>,
    %c4_191 = arith.constant 4 : index
    %c0_192 = arith.constant 0 : index
    %252 = vector.load %arg13[%c4_191, %c0_192] : memref<16x128xf32, #tpu.memory_space<vmem>>, vector<2x128xf32>
    %253 = vector.extract_strided_slice %252 {offsets = [0, 0], sizes = [2, 64], strides = [1, 1]} : vector<2x128xf32> to vector<2x64xf32>
    %c10_193 = arith.constant 10 : index
    %c0_194 = arith.constant 0 : index
    %254 = vector.load %arg13[%c10_193, %c0_194] : memref<16x128xf32, #tpu.memory_space<vmem>>, vector<2x128xf32>
    %255 = vector.extract_strided_slice %254 {offsets = [0, 64], sizes = [2, 64], strides = [1, 1]} : vector<2x128xf32> to vector<2x64xf32>
    %256 = tpu.concatenate %253, %255 in 1 : vector<2x64xf32>, vector<2x64xf32> -> vector<2x128xf32>
    %cst_195 = arith.constant dense<0.000000e+00> : vector<2x128xf32>
    %257 = tpu.matmul %247, %226, %cst_195 {dimension_numbers = #tpu.dot_dimension_numbers<[1], [0], [0], [1], [0, 0, 1, 1], [], []>} : vector<2x128xf32>, vector<128x128xf32>, vector<2x128xf32> -> vector<2x128xf32>
    %258 = arith.addf %256, %257 : vector<2x128xf32>
    %259 = math.tanh %258 : vector<2x128xf32>
    %260 = vector.extract_strided_slice %259 {offsets = [0, 0], sizes = [2, 64], strides = [1, 1]} : vector<2x128xf32> to vector<2x64xf32>
    %c4_196 = arith.constant 4 : index
    %c0_197 = arith.constant 0 : index
    %261 = vector.load %arg12[%c4_196, %c0_197] : memref<16x128xf32, #tpu.memory_space<vmem>>, vector<2x64xf32>
    tpu.vector_store %arg12[%c4_196, %c0_197], %260 {strides = array<i32>} : memref<16x128xf32, #tpu.memory_space<vmem>>, vector<2x64xf32>,
    %262 = vector.extract_strided_slice %259 {offsets = [0, 64], sizes = [2, 64], strides = [1, 1]} : vector<2x128xf32> to vector<2x64xf32>
    %c10_198 = arith.constant 10 : index
    %c64_199 = arith.constant 64 : index
    %263 = vector.load %arg12[%c10_198, %c64_199] : memref<16x128xf32, #tpu.memory_space<vmem>>, vector<2x64xf32>
    tpu.vector_store %arg12[%c10_198, %c64_199], %262 {strides = array<i32>} : memref<16x128xf32, #tpu.memory_space<vmem>>, vector<2x64xf32>,
    %c6_200 = arith.constant 6 : index
    %c0_201 = arith.constant 0 : index
    %264 = vector.load %arg13[%c6_200, %c0_201] : memref<16x128xf32, #tpu.memory_space<vmem>>, vector<2x128xf32>
    %265 = vector.extract_strided_slice %264 {offsets = [0, 0], sizes = [2, 64], strides = [1, 1]} : vector<2x128xf32> to vector<2x64xf32>
    %c8_202 = arith.constant 8 : index
    %c0_203 = arith.constant 0 : index
    %266 = vector.load %arg13[%c8_202, %c0_203] : memref<16x128xf32, #tpu.memory_space<vmem>>, vector<2x128xf32>
    %267 = vector.extract_strided_slice %266 {offsets = [0, 64], sizes = [2, 64], strides = [1, 1]} : vector<2x128xf32> to vector<2x64xf32>
    %268 = tpu.concatenate %265, %267 in 1 : vector<2x64xf32>, vector<2x64xf32> -> vector<2x128xf32>
    %cst_204 = arith.constant dense<0.000000e+00> : vector<2x128xf32>
    %269 = tpu.matmul %259, %226, %cst_204 {dimension_numbers = #tpu.dot_dimension_numbers<[1], [0], [0], [1], [0, 0, 1, 1], [], []>} : vector<2x128xf32>, vector<128x128xf32>, vector<2x128xf32> -> vector<2x128xf32>
    %270 = arith.addf %268, %269 : vector<2x128xf32>
    %271 = math.tanh %270 : vector<2x128xf32>
    %272 = vector.extract_strided_slice %271 {offsets = [0, 0], sizes = [2, 64], strides = [1, 1]} : vector<2x128xf32> to vector<2x64xf32>
    %c6_205 = arith.constant 6 : index
    %c0_206 = arith.constant 0 : index
    %273 = vector.load %arg12[%c6_205, %c0_206] : memref<16x128xf32, #tpu.memory_space<vmem>>, vector<2x64xf32>
    tpu.vector_store %arg12[%c6_205, %c0_206], %272 {strides = array<i32>} : memref<16x128xf32, #tpu.memory_space<vmem>>, vector<2x64xf32>,
    %274 = vector.extract_strided_slice %271 {offsets = [0, 64], sizes = [2, 64], strides = [1, 1]} : vector<2x128xf32> to vector<2x64xf32>
    %c8_207 = arith.constant 8 : index
    %c64_208 = arith.constant 64 : index
    %275 = vector.load %arg12[%c8_207, %c64_208] : memref<16x128xf32, #tpu.memory_space<vmem>>, vector<2x64xf32>
    tpu.vector_store %arg12[%c8_207, %c64_208], %274 {strides = array<i32>} : memref<16x128xf32, #tpu.memory_space<vmem>>, vector<2x64xf32>,
    %c8_209 = arith.constant 8 : index
    %c0_210 = arith.constant 0 : index
    %276 = vector.load %arg13[%c8_209, %c0_210] : memref<16x128xf32, #tpu.memory_space<vmem>>, vector<2x128xf32>
    %277 = vector.extract_strided_slice %276 {offsets = [0, 0], sizes = [2, 64], strides = [1, 1]} : vector<2x128xf32> to vector<2x64xf32>
    %c6_211 = arith.constant 6 : index
    %c0_212 = arith.constant 0 : index
    %278 = vector.load %arg13[%c6_211, %c0_212] : memref<16x128xf32, #tpu.memory_space<vmem>>, vector<2x128xf32>
    %279 = vector.extract_strided_slice %278 {offsets = [0, 64], sizes = [2, 64], strides = [1, 1]} : vector<2x128xf32> to vector<2x64xf32>
    %280 = tpu.concatenate %277, %279 in 1 : vector<2x64xf32>, vector<2x64xf32> -> vector<2x128xf32>
    %cst_213 = arith.constant dense<0.000000e+00> : vector<2x128xf32>
    %281 = tpu.matmul %271, %226, %cst_213 {dimension_numbers = #tpu.dot_dimension_numbers<[1], [0], [0], [1], [0, 0, 1, 1], [], []>} : vector<2x128xf32>, vector<128x128xf32>, vector<2x128xf32> -> vector<2x128xf32>
    %282 = arith.addf %280, %281 : vector<2x128xf32>
    %283 = math.tanh %282 : vector<2x128xf32>
    %284 = vector.extract_strided_slice %283 {offsets = [0, 0], sizes = [2, 64], strides = [1, 1]} : vector<2x128xf32> to vector<2x64xf32>
    %c8_214 = arith.constant 8 : index
    %c0_215 = arith.constant 0 : index
    %285 = vector.load %arg12[%c8_214, %c0_215] : memref<16x128xf32, #tpu.memory_space<vmem>>, vector<2x64xf32>
    tpu.vector_store %arg12[%c8_214, %c0_215], %284 {strides = array<i32>} : memref<16x128xf32, #tpu.memory_space<vmem>>, vector<2x64xf32>,
    %286 = vector.extract_strided_slice %283 {offsets = [0, 64], sizes = [2, 64], strides = [1, 1]} : vector<2x128xf32> to vector<2x64xf32>
    %c6_216 = arith.constant 6 : index
    %c64_217 = arith.constant 64 : index
    %287 = vector.load %arg12[%c6_216, %c64_217] : memref<16x128xf32, #tpu.memory_space<vmem>>, vector<2x64xf32>
    tpu.vector_store %arg12[%c6_216, %c64_217], %286 {strides = array<i32>} : memref<16x128xf32, #tpu.memory_space<vmem>>, vector<2x64xf32>,
    %c10_218 = arith.constant 10 : index
    %c0_219 = arith.constant 0 : index
    %288 = vector.load %arg13[%c10_218, %c0_219] : memref<16x128xf32, #tpu.memory_space<vmem>>, vector<2x128xf32>
    %289 = vector.extract_strided_slice %288 {offsets = [0, 0], sizes = [2, 64], strides = [1, 1]} : vector<2x128xf32> to vector<2x64xf32>
    %c4_220 = arith.constant 4 : index
    %c0_221 = arith.constant 0 : index
    %290 = vector.load %arg13[%c4_220, %c0_221] : memref<16x128xf32, #tpu.memory_space<vmem>>, vector<2x128xf32>
    %291 = vector.extract_strided_slice %290 {offsets = [0, 64], sizes = [2, 64], strides = [1, 1]} : vector<2x128xf32> to vector<2x64xf32>
    %292 = tpu.concatenate %289, %291 in 1 : vector<2x64xf32>, vector<2x64xf32> -> vector<2x128xf32>
    %cst_222 = arith.constant dense<0.000000e+00> : vector<2x128xf32>
    %293 = tpu.matmul %283, %226, %cst_222 {dimension_numbers = #tpu.dot_dimension_numbers<[1], [0], [0], [1], [0, 0, 1, 1], [], []>} : vector<2x128xf32>, vector<128x128xf32>, vector<2x128xf32> -> vector<2x128xf32>
    %294 = arith.addf %292, %293 : vector<2x128xf32>
    %295 = math.tanh %294 : vector<2x128xf32>
    %296 = vector.extract_strided_slice %295 {offsets = [0, 0], sizes = [2, 64], strides = [1, 1]} : vector<2x128xf32> to vector<2x64xf32>
    %c10_223 = arith.constant 10 : index
    %c0_224 = arith.constant 0 : index
    %297 = vector.load %arg12[%c10_223, %c0_224] : memref<16x128xf32, #tpu.memory_space<vmem>>, vector<2x64xf32>
    tpu.vector_store %arg12[%c10_223, %c0_224], %296 {strides = array<i32>} : memref<16x128xf32, #tpu.memory_space<vmem>>, vector<2x64xf32>,
    %298 = vector.extract_strided_slice %295 {offsets = [0, 64], sizes = [2, 64], strides = [1, 1]} : vector<2x128xf32> to vector<2x64xf32>
    %c4_225 = arith.constant 4 : index
    %c64_226 = arith.constant 64 : index
    %299 = vector.load %arg12[%c4_225, %c64_226] : memref<16x128xf32, #tpu.memory_space<vmem>>, vector<2x64xf32>
    tpu.vector_store %arg12[%c4_225, %c64_226], %298 {strides = array<i32>} : memref<16x128xf32, #tpu.memory_space<vmem>>, vector<2x64xf32>,
    %c12_227 = arith.constant 12 : index
    %c0_228 = arith.constant 0 : index
    %300 = vector.load %arg13[%c12_227, %c0_228] : memref<16x128xf32, #tpu.memory_space<vmem>>, vector<2x128xf32>
    %301 = vector.extract_strided_slice %300 {offsets = [0, 0], sizes = [2, 64], strides = [1, 1]} : vector<2x128xf32> to vector<2x64xf32>
    %c2_229 = arith.constant 2 : index
    %c0_230 = arith.constant 0 : index
    %302 = vector.load %arg13[%c2_229, %c0_230] : memref<16x128xf32, #tpu.memory_space<vmem>>, vector<2x128xf32>
    %303 = vector.extract_strided_slice %302 {offsets = [0, 64], sizes = [2, 64], strides = [1, 1]} : vector<2x128xf32> to vector<2x64xf32>
    %304 = tpu.concatenate %301, %303 in 1 : vector<2x64xf32>, vector<2x64xf32> -> vector<2x128xf32>
    %cst_231 = arith.constant dense<0.000000e+00> : vector<2x128xf32>
    %305 = tpu.matmul %295, %226, %cst_231 {dimension_numbers = #tpu.dot_dimension_numbers<[1], [0], [0], [1], [0, 0, 1, 1], [], []>} : vector<2x128xf32>, vector<128x128xf32>, vector<2x128xf32> -> vector<2x128xf32>
    %306 = arith.addf %304, %305 : vector<2x128xf32>
    %307 = math.tanh %306 : vector<2x128xf32>
    %308 = vector.extract_strided_slice %307 {offsets = [0, 0], sizes = [2, 64], strides = [1, 1]} : vector<2x128xf32> to vector<2x64xf32>
    %c12_232 = arith.constant 12 : index
    %c0_233 = arith.constant 0 : index
    %309 = vector.load %arg12[%c12_232, %c0_233] : memref<16x128xf32, #tpu.memory_space<vmem>>, vector<2x64xf32>
    tpu.vector_store %arg12[%c12_232, %c0_233], %308 {strides = array<i32>} : memref<16x128xf32, #tpu.memory_space<vmem>>, vector<2x64xf32>,
    %310 = vector.extract_strided_slice %307 {offsets = [0, 64], sizes = [2, 64], strides = [1, 1]} : vector<2x128xf32> to vector<2x64xf32>
    %c2_234 = arith.constant 2 : index
    %c64_235 = arith.constant 64 : index
    %311 = vector.load %arg12[%c2_234, %c64_235] : memref<16x128xf32, #tpu.memory_space<vmem>>, vector<2x64xf32>
    tpu.vector_store %arg12[%c2_234, %c64_235], %310 {strides = array<i32>} : memref<16x128xf32, #tpu.memory_space<vmem>>, vector<2x64xf32>,
    %c14_236 = arith.constant 14 : index
    %c0_237 = arith.constant 0 : index
    %312 = vector.load %arg13[%c14_236, %c0_237] : memref<16x128xf32, #tpu.memory_space<vmem>>, vector<2x128xf32>
    %313 = vector.extract_strided_slice %312 {offsets = [0, 0], sizes = [2, 64], strides = [1, 1]} : vector<2x128xf32> to vector<2x64xf32>
    %c0_238 = arith.constant 0 : index
    %c0_239 = arith.constant 0 : index
    %314 = vector.load %arg13[%c0_238, %c0_239] : memref<16x128xf32, #tpu.memory_space<vmem>>, vector<2x128xf32>
    %315 = vector.extract_strided_slice %314 {offsets = [0, 64], sizes = [2, 64], strides = [1, 1]} : vector<2x128xf32> to vector<2x64xf32>
    %316 = tpu.concatenate %313, %315 in 1 : vector<2x64xf32>, vector<2x64xf32> -> vector<2x128xf32>
    %cst_240 = arith.constant dense<0.000000e+00> : vector<2x128xf32>
    %317 = tpu.matmul %307, %226, %cst_240 {dimension_numbers = #tpu.dot_dimension_numbers<[1], [0], [0], [1], [0, 0, 1, 1], [], []>} : vector<2x128xf32>, vector<128x128xf32>, vector<2x128xf32> -> vector<2x128xf32>
    %318 = arith.addf %316, %317 : vector<2x128xf32>
    %319 = math.tanh %318 : vector<2x128xf32>
    %320 = vector.extract_strided_slice %319 {offsets = [0, 0], sizes = [2, 64], strides = [1, 1]} : vector<2x128xf32> to vector<2x64xf32>
    %c14_241 = arith.constant 14 : index
    %c0_242 = arith.constant 0 : index
    %321 = vector.load %arg12[%c14_241, %c0_242] : memref<16x128xf32, #tpu.memory_space<vmem>>, vector<2x64xf32>
    tpu.vector_store %arg12[%c14_241, %c0_242], %320 {strides = array<i32>} : memref<16x128xf32, #tpu.memory_space<vmem>>, vector<2x64xf32>,
    %322 = vector.extract_strided_slice %319 {offsets = [0, 64], sizes = [2, 64], strides = [1, 1]} : vector<2x128xf32> to vector<2x64xf32>
    %c0_243 = arith.constant 0 : index
    %c64_244 = arith.constant 64 : index
    %323 = vector.load %arg12[%c0_243, %c64_244] : memref<16x128xf32, #tpu.memory_space<vmem>>, vector<2x64xf32>
    tpu.vector_store %arg12[%c0_243, %c64_244], %322 {strides = array<i32>} : memref<16x128xf32, #tpu.memory_space<vmem>>, vector<2x64xf32>,
    %c14_245 = arith.constant 14 : index
    %c0_246 = arith.constant 0 : index
    %324 = vector.load %arg12[%c14_245, %c0_246] : memref<16x128xf32, #tpu.memory_space<vmem>>, vector<2x128xf32>
    %c0_247 = arith.constant 0 : index
    %c0_248 = arith.constant 0 : index
    %325 = vector.load %arg9[%c0_247, %c0_248] : memref<128x128xf32, #tpu.memory_space<vmem>>, vector<128x128xf32>
    %cst_249 = arith.constant dense<0.000000e+00> : vector<2x128xf32>
    %326 = tpu.matmul %324, %325, %cst_249 {dimension_numbers = #tpu.dot_dimension_numbers<[1], [0], [0], [1], [0, 0, 1, 1], [], []>} : vector<2x128xf32>, vector<128x128xf32>, vector<2x128xf32> -> vector<2x128xf32>
    %c0_250 = arith.constant 0 : index
    %c0_251 = arith.constant 0 : index
    %327 = vector.load %arg10[%c0_250, %c0_251] : memref<1x128xf32, #tpu.memory_space<vmem>>, vector<1x128xf32>
    %328 = vector.broadcast %327 : vector<1x128xf32> to vector<2x128xf32>
    %329 = arith.addf %326, %328 : vector<2x128xf32>
    %c0_252 = arith.constant 0 : index
    %c0_253 = arith.constant 0 : index
    %330 = vector.load %arg11[%c0_252, %c0_253] : memref<2x128xf32, #tpu.memory_space<vmem>>, vector<2x128xf32>
    tpu.vector_store %arg11[%c0_252, %c0_253], %329 {strides = array<i32>} : memref<2x128xf32, #tpu.memory_space<vmem>>, vector<2x128xf32>,
    return
  }
  func.func @transform_0(%arg0: i32) -> (i32, i32, i32) {
    %c0_i32 = arith.constant 0 : i32
    %c0_i32_0 = arith.constant 0 : i32
    %c0_i32_1 = arith.constant 0 : i32
    return %c0_i32, %arg0, %c0_i32_0 : i32, i32, i32
  }
  func.func @transform_1(%arg0: i32) -> (i32, i32) {
    %c0_i32 = arith.constant 0 : i32
    %c0_i32_0 = arith.constant 0 : i32
    %c0_i32_1 = arith.constant 0 : i32
    return %c0_i32, %c0_i32_0 : i32, i32
  }
  func.func @transform_2(%arg0: i32) -> (i32, i32) {
    %c0_i32 = arith.constant 0 : i32
    %c0_i32_0 = arith.constant 0 : i32
    %c0_i32_1 = arith.constant 0 : i32
    return %c0_i32, %c0_i32_0 : i32, i32
  }
  func.func @transform_3(%arg0: i32) -> (i32, i32) {
    %c0_i32 = arith.constant 0 : i32
    %c0_i32_0 = arith.constant 0 : i32
    %c0_i32_1 = arith.constant 0 : i32
    return %c0_i32, %c0_i32_0 : i32, i32
  }
  func.func @transform_4(%arg0: i32) -> (i32, i32) {
    %c0_i32 = arith.constant 0 : i32
    %c0_i32_0 = arith.constant 0 : i32
    %c0_i32_1 = arith.constant 0 : i32
    return %c0_i32, %c0_i32_0 : i32, i32
  }
  func.func @transform_5(%arg0: i32) -> (i32, i32) {
    %c0_i32 = arith.constant 0 : i32
    %c0_i32_0 = arith.constant 0 : i32
    %c0_i32_1 = arith.constant 0 : i32
    return %c0_i32, %c0_i32_0 : i32, i32
  }
  func.func @transform_6(%arg0: i32) -> (i32, i32) {
    %c0_i32 = arith.constant 0 : i32
    %c0_i32_0 = arith.constant 0 : i32
    %c0_i32_1 = arith.constant 0 : i32
    return %c0_i32, %c0_i32_0 : i32, i32
  }
  func.func @transform_7(%arg0: i32) -> (i32, i32) {
    %c0_i32 = arith.constant 0 : i32
    %c0_i32_0 = arith.constant 0 : i32
    %c0_i32_1 = arith.constant 0 : i32
    return %c0_i32, %c0_i32_0 : i32, i32
  }
  func.func @transform_8(%arg0: i32) -> (i32, i32) {
    %c0_i32 = arith.constant 0 : i32
    %c0_i32_0 = arith.constant 0 : i32
    %c0_i32_1 = arith.constant 0 : i32
    return %c0_i32, %c0_i32_0 : i32, i32
  }
  func.func @transform_9(%arg0: i32) -> (i32, i32) {
    %c0_i32 = arith.constant 0 : i32
    %c0_i32_0 = arith.constant 0 : i32
    %c0_i32_1 = arith.constant 0 : i32
    return %c0_i32, %c0_i32_0 : i32, i32
  }
  func.func @transform_10(%arg0: i32) -> (i32, i32) {
    %c0_i32 = arith.constant 0 : i32
    %c0_i32_0 = arith.constant 0 : i32
    return %arg0, %c0_i32 : i32, i32
  }
}

</mosaic_0001>

<bundles_post_ra>
// kernel: rnn_forward.1
= control target key start
LH: loop header
LB: loop body
LE: loop exit
PB: predicated region body
PF: predicated region fallthrough
CT: control target
= control target key end

     0   :  { %s1947_s0 = inlined_call_operand.vmem [shape: f32[8,2,128], index: 0, kind: input, shape index: {}]   ;;  %s1948_s1 = inlined_call_operand.vmem [shape: f32[128,128], index: 1, kind: input, shape index: {}]   ;;  %s1949_s2 = inlined_call_operand.vmem [shape: f32[128,128], index: 2, kind: input, shape index: {}]   ;;  %s1950_s3 = inlined_call_operand.vmem [shape: f32[1,128], index: 3, kind: input, shape index: {}]   ;;  %s1951_s4 = inlined_call_operand.vmem [shape: f32[128,128], index: 4, kind: input, shape index: {}]   ;;  %s1952_s5 = inlined_call_operand.vmem [shape: f32[128,128], index: 5, kind: input, shape index: {}]   ;;  %s1953_s6 = inlined_call_operand.vmem [shape: f32[1,128], index: 6, kind: input, shape index: {}]   ;;  %s1954_s7 = inlined_call_operand.vmem [shape: f32[128,128], index: 7, kind: input, shape index: {}]   ;;  %s1955_s8 = inlined_call_operand.vmem [shape: f32[128,128], index: 8, kind: input, shape index: {}]   ;;  %s1956_s9 = inlined_call_operand.vmem [shape: f32[1,128], index: 9, kind: input, shape index: {}]   ;;  %s1957_s10 = inlined_call_operand.hbm [shape: f32[2,128], index: 10, kind: output, shape index: {}]  }
   0x1   :  { %v1047_v0 = vld [vmem:[%s1948_s1 + $0x78] sm:$0xff]  ;;  %v1052_v1 = vld [vmem:[%s1948_s1 + $0x70] sm:$0xff]  ;;  %v1059_v2 = vld [vmem:[%s1948_s1 + $0x68] sm:$0xff] }
   0x2   :  { %57 = vmatpush.msra.mxu0 %v1047_v0  ;;  %88 = vmatpush.msra.mxu1 %v1047_v0  ;;  %v1068_v3 = vld [vmem:[%s1948_s1 + $0x60] sm:$0xff]  ;;  %v1076_v4 = vld [vmem:[%s1948_s1 + $0x58] sm:$0xff] }
   0x3   :  { %117 = vmatpush.msra.mxu2 %v1047_v0  ;;  %146 = vmatpush.msra.mxu3 %v1047_v0 }
   0x4   :  { %58 = vmatpush.msra.mxu0 %v1052_v1  ;;  %89 = vmatpush.msra.mxu1 %v1052_v1 }
   0x5   :  { %118 = vmatpush.msra.mxu2 %v1052_v1  ;;  %147 = vmatpush.msra.mxu3 %v1052_v1 }
   0x6   :  { %59 = vmatpush.msra.mxu0 %v1059_v2  ;;  %90 = vmatpush.msra.mxu1 %v1059_v2 }
   0x7   :  { %119 = vmatpush.msra.mxu2 %v1059_v2  ;;  %148 = vmatpush.msra.mxu3 %v1059_v2 }
   0x8   :  { %60 = vmatpush.msra.mxu0 %v1068_v3  ;;  %91 = vmatpush.msra.mxu1 %v1068_v3 }
   0x9   :  { %15 = vsyncpa [#allocation5], 0  ;;  %v1086_v5 = vld [vmem:[%s1948_s1 + $0x50] sm:$0xff]  ;;  %120 = vmatpush.msra.mxu2 %v1068_v3  ;;  %149 = vmatpush.msra.mxu3 %v1068_v3  ;;  %v1095_v6 = vld [vmem:[%s1948_s1 + $0x48] sm:$0xff]  ;;  %v987_v16 = vmov 0.0   ;;  %vm55_vm0 = vcmask 523264  }
   0xa   :  { %61 = vmatpush.msra.mxu0 %v1076_v4  ;;  %92 = vmatpush.msra.mxu1 %v1076_v4  ;;  %v1104_v7 = vld [vmem:[%s1948_s1 + $0x40] sm:$0xff]  ;;  %v1113_v8 = vld [vmem:[%s1948_s1 + $0x38] sm:$0xff]  ;;  %v1122_v9 = vld [vmem:[%s1948_s1 + $0x30] sm:$0xff]  ;;  %vm79_vm1 = vcmask 517120   ;;  %vm81_vm2 = vcmask 1041920   ;;  %s885_s13 = sshll.u32 %s1957_s10, 4  ;;  %s886_s13 = int_to_ptr.hbm [resolvable:$true] %s885_s13 }
   0xb   :  { %121 = vmatpush.msra.mxu2 %v1076_v4  ;;  %150 = vmatpush.msra.mxu3 %v1076_v4  ;;  %v1131_v10 = vld [vmem:[%s1948_s1 + $0x28] sm:$0xff]  ;;  %v1140_v11 = vld [vmem:[%s1948_s1 + $0x20] sm:$0xff]  ;;  %v1149_v12 = vld [vmem:[%s1948_s1 + $0x18] sm:$0xff] }
   0xc   :  { %62 = vmatpush.msra.mxu0 %v1086_v5  ;;  %93 = vmatpush.msra.mxu1 %v1086_v5  ;;  %v1158_v13 = vld [vmem:[%s1948_s1 + $0x10] sm:$0xff]  ;;  %v1167_v14 = vld [vmem:[%s1948_s1 + $0x8] sm:$0xff]  ;;  %v1176_v15 = vld [vmem:[%s1948_s1] sm:$0xff] }
   0xd   :  { %122 = vmatpush.msra.mxu2 %v1086_v5  ;;  %151 = vmatpush.msra.mxu3 %v1086_v5  ;;  %v52_v17 = vld [vmem:[%s1947_s0] sm:$0x3]  ;;  %v894_v18 = vld [vmem:[%s1947_s0 + $0xe] sm:$0x3]  ;;  %v895_v23 = vld [vmem:[%s1947_s0 + $0x2] sm:$0x3] }
   0xe   :  { %63 = vmatpush.msra.mxu0 %v1095_v6  ;;  %94 = vmatpush.msra.mxu1 %v1095_v6  ;;  %v56_v19 = vsel %vm55_vm0, %v52_v17, %v894_v18  ;;  %v896_v24 = vld [vmem:[%s1947_s0 + $0xc] sm:$0x3]  ;;  %v897_v29 = vld [vmem:[%s1947_s0 + $0x4] sm:$0x3]  ;;  %v898_v30 = vld [vmem:[%s1947_s0 + $0xa] sm:$0x3] }
   0xf   :  { %123 = vmatpush.msra.mxu2 %v1095_v6  ;;  %152 = vmatpush.msra.mxu3 %v1095_v6  ;;  %v87_v25 = vsel %vm55_vm0, %v895_v23, %v896_v24  ;;  %v116_v31 = vsel %vm55_vm0, %v897_v29, %v898_v30  ;;  %v899_v35 = vld [vmem:[%s1947_s0 + $0x6] sm:$0x3]  ;;  %v900_v36 = vld [vmem:[%s1947_s0 + $0x8] sm:$0x3]  ;;  %v903_v47 = vld [vmem:[%s1947_s0 + $0xa] sm:$0x3] }
  0x10   :  { %64 = vmatpush.msra.mxu0 %v1104_v7  ;;  %95 = vmatpush.msra.mxu1 %v1104_v7  ;;  %v145_v37 = vsel %vm55_vm0, %v899_v35, %v900_v36  ;;  %v901_v41 = vld [vmem:[%s1947_s0 + $0x8] sm:$0x3]  ;;  %v902_v42 = vld [vmem:[%s1947_s0 + $0x6] sm:$0x3]  ;;  %v904_v48 = vld [vmem:[%s1947_s0 + $0x4] sm:$0x3] }
  0x11   :  { %124 = vmatpush.msra.mxu2 %v1104_v7  ;;  %153 = vmatpush.msra.mxu3 %v1104_v7  ;;  %v172_v43 = vsel %vm55_vm0, %v901_v41, %v902_v42  ;;  %v199_v49 = vsel %vm55_vm0, %v903_v47, %v904_v48  ;;  %v295_v53 = vld [vmem:[%s1949_s2 + $0x78] sm:$0xff]  ;;  %v294_v54 = vld [vmem:[%s1949_s2 + $0x70] sm:$0xff]  ;;  %v293_v55 = vld [vmem:[%s1949_s2 + $0x68] sm:$0xff] }
  0x12   :  { %65 = vmatpush.msra.mxu0 %v1113_v8  ;;  %96 = vmatpush.msra.mxu1 %v1113_v8  ;;  %v292_v56 = vld [vmem:[%s1949_s2 + $0x60] sm:$0xff]  ;;  %v291_v57 = vld [vmem:[%s1949_s2 + $0x58] sm:$0xff]  ;;  %v290_v58 = vld [vmem:[%s1949_s2 + $0x50] sm:$0xff] }
  0x13   :  { %125 = vmatpush.msra.mxu2 %v1113_v8  ;;  %154 = vmatpush.msra.mxu3 %v1113_v8  ;;  %v289_v59 = vld [vmem:[%s1949_s2 + $0x48] sm:$0xff]  ;;  %v906_v61 = vld [vmem:[%s1947_s0 + $0x2] sm:$0x3]  ;;  %v252_v24 = vld [vmem:[%s1947_s0] sm:$0x3] }
  0x14   :  { %66 = vmatpush.msra.mxu0 %v1122_v9  ;;  %97 = vmatpush.msra.mxu1 %v1122_v9  ;;  %v905_v60 = vld [vmem:[%s1947_s0 + $0xc] sm:$0x3]  ;;  %v280_v17 = vld [vmem:[%s1949_s2] sm:$0xff]  ;;  %v907_v23 = vld [vmem:[%s1947_s0 + $0xe] sm:$0x3] }
  0x15   :  { %126 = vmatpush.msra.mxu2 %v1122_v9  ;;  %155 = vmatpush.msra.mxu3 %v1122_v9  ;;  %v226_v62 = vsel %vm55_vm0, %v905_v60, %v906_v61  ;;  %v1414_v18 = vld [vmem:[%s1951_s4 + $0x48] sm:$0xff]  ;;  %v910_v36 = vld [vmem:[%s1950_s3] ss:$0 sm:$0xff] }
  0x16   :  { %67 = vmatpush.msra.mxu0 %v1131_v10  ;;  %98 = vmatpush.msra.mxu1 %v1131_v10  ;;  %v1488_v30 = vld [vmem:[%s1951_s4 + $0x8] sm:$0xff] }
  0x17   :  { %127 = vmatpush.msra.mxu2 %v1131_v10  ;;  %156 = vmatpush.msra.mxu3 %v1131_v10 }
  0x18   :  { %68 = vmatpush.msra.mxu0 %v1140_v11  ;;  %99 = vmatpush.msra.mxu1 %v1140_v11 }
  0x19   :  { %128 = vmatpush.msra.mxu2 %v1140_v11  ;;  %157 = vmatpush.msra.mxu3 %v1140_v11 }
  0x1a   :  { %69 = vmatpush.msra.mxu0 %v1149_v12  ;;  %100 = vmatpush.msra.mxu1 %v1149_v12 }
  0x1b   :  { %129 = vmatpush.msra.mxu2 %v1149_v12  ;;  %158 = vmatpush.msra.mxu3 %v1149_v12 }
  0x1c   :  { %70 = vmatpush.msra.mxu0 %v1158_v13  ;;  %101 = vmatpush.msra.mxu1 %v1158_v13 }
  0x1d   :  { %130 = vmatpush.msra.mxu2 %v1158_v13  ;;  %159 = vmatpush.msra.mxu3 %v1158_v13 }
  0x1e   :  { %71 = vmatpush.msra.mxu0 %v1167_v14  ;;  %102 = vmatpush.msra.mxu1 %v1167_v14 }
  0x1f   :  { %131 = vmatpush.msra.mxu2 %v1167_v14  ;;  %160 = vmatpush.msra.mxu3 %v1167_v14 }
  0x20   :  { %72 = vmatpush.msra.mxu0 %v1176_v15  ;;  %103 = vmatpush.msra.mxu1 %v1176_v15 }
  0x21   :  { %73 = vmatmul.f32.vlgmr.msra.gmra.mxu0 %v987_v16  ;;  %132 = vmatpush.msra.mxu2 %v1176_v15 }
  0x22   :  { %161 = vmatpush.msra.mxu3 %v1176_v15  ;;  %173 = vmatpush.msrb.mxu0 %v1047_v0 }
  0x23   :  { %200 = vmatpush.msrb.mxu1 %v1047_v0  ;;  %227 = vmatpush.msrb.mxu2 %v1047_v0 }
  0x24   :  { %174 = vmatpush.msrb.mxu0 %v1052_v1  ;;  %254 = vmatpush.msrb.mxu3 %v1047_v0 }
  0x25   :  { %201 = vmatpush.msrb.mxu1 %v1052_v1  ;;  %228 = vmatpush.msrb.mxu2 %v1052_v1 }
  0x26   :  { %175 = vmatpush.msrb.mxu0 %v1059_v2  ;;  %255 = vmatpush.msrb.mxu3 %v1052_v1 }
  0x27   :  { %202 = vmatpush.msrb.mxu1 %v1059_v2  ;;  %229 = vmatpush.msrb.mxu2 %v1059_v2 }
  0x28   :  { %176 = vmatpush.msrb.mxu0 %v1068_v3  ;;  %256 = vmatpush.msrb.mxu3 %v1059_v2  ;;  %v288_v2 = vld [vmem:[%s1949_s2 + $0x40] sm:$0xff] }
  0x29   :  { %203 = vmatpush.msrb.mxu1 %v1068_v3  ;;  %230 = vmatpush.msrb.mxu2 %v1068_v3 }
  0x2a   :  { %177 = vmatpush.msrb.mxu0 %v1076_v4  ;;  %257 = vmatpush.msrb.mxu3 %v1068_v3  ;;  %v287_v3 = vld [vmem:[%s1949_s2 + $0x38] sm:$0xff] }
  0x2b   :  { %204 = vmatpush.msrb.mxu1 %v1076_v4  ;;  %231 = vmatpush.msrb.mxu2 %v1076_v4 }
  0x2c   :  { %178 = vmatpush.msrb.mxu0 %v1086_v5  ;;  %258 = vmatpush.msrb.mxu3 %v1076_v4  ;;  %v286_v4 = vld [vmem:[%s1949_s2 + $0x30] sm:$0xff] }
  0x2d   :  { %205 = vmatpush.msrb.mxu1 %v1086_v5  ;;  %232 = vmatpush.msrb.mxu2 %v1086_v5 }
  0x2e   :  { %179 = vmatpush.msrb.mxu0 %v1095_v6  ;;  %259 = vmatpush.msrb.mxu3 %v1086_v5  ;;  %v1349_v5 = vld [vmem:[%s1951_s4 + $0x78] sm:$0xff] }
  0x2f   :  { %206 = vmatpush.msrb.mxu1 %v1095_v6  ;;  %233 = vmatpush.msrb.mxu2 %v1095_v6 }
  0x30   :  { %180 = vmatpush.msrb.mxu0 %v1104_v7  ;;  %260 = vmatpush.msrb.mxu3 %v1095_v6  ;;  %v285_v6 = vld [vmem:[%s1949_s2 + $0x28] sm:$0xff] }
  0x31   :  { %207 = vmatpush.msrb.mxu1 %v1104_v7  ;;  %234 = vmatpush.msrb.mxu2 %v1104_v7 }
  0x32   :  { %181 = vmatpush.msrb.mxu0 %v1113_v8  ;;  %261 = vmatpush.msrb.mxu3 %v1104_v7  ;;  %v1359_v7 = vld [vmem:[%s1951_s4 + $0x70] sm:$0xff] }
  0x33   :  { %208 = vmatpush.msrb.mxu1 %v1113_v8  ;;  %235 = vmatpush.msrb.mxu2 %v1113_v8 }
  0x34   :  { %182 = vmatpush.msrb.mxu0 %v1122_v9  ;;  %262 = vmatpush.msrb.mxu3 %v1113_v8  ;;  %v284_v8 = vld [vmem:[%s1949_s2 + $0x20] sm:$0xff] }
  0x35   :  { %209 = vmatpush.msrb.mxu1 %v1122_v9  ;;  %236 = vmatpush.msrb.mxu2 %v1122_v9 }
  0x36   :  { %183 = vmatpush.msrb.mxu0 %v1131_v10  ;;  %263 = vmatpush.msrb.mxu3 %v1122_v9  ;;  %v1370_v9 = vld [vmem:[%s1951_s4 + $0x68] sm:$0xff] }
  0x37   :  { %210 = vmatpush.msrb.mxu1 %v1131_v10  ;;  %237 = vmatpush.msrb.mxu2 %v1131_v10 }
  0x38   :  { %184 = vmatpush.msrb.mxu0 %v1140_v11  ;;  %264 = vmatpush.msrb.mxu3 %v1131_v10  ;;  %v283_v10 = vld [vmem:[%s1949_s2 + $0x18] sm:$0xff] }
  0x39   :  { %211 = vmatpush.msrb.mxu1 %v1140_v11  ;;  %238 = vmatpush.msrb.mxu2 %v1140_v11 }
  0x3a   :  { %185 = vmatpush.msrb.mxu0 %v1149_v12  ;;  %265 = vmatpush.msrb.mxu3 %v1140_v11  ;;  %v1381_v11 = vld [vmem:[%s1951_s4 + $0x60] sm:$0xff] }
  0x3b   :  { %212 = vmatpush.msrb.mxu1 %v1149_v12  ;;  %239 = vmatpush.msrb.mxu2 %v1149_v12 }
  0x3c   :  { %186 = vmatpush.msrb.mxu0 %v1158_v13  ;;  %266 = vmatpush.msrb.mxu3 %v1149_v12  ;;  %v282_v12 = vld [vmem:[%s1949_s2 + $0x10] sm:$0xff] }
  0x3d   :  { %213 = vmatpush.msrb.mxu1 %v1158_v13  ;;  %240 = vmatpush.msrb.mxu2 %v1158_v13 }
  0x3e   :  { %187 = vmatpush.msrb.mxu0 %v1167_v14  ;;  %267 = vmatpush.msrb.mxu3 %v1158_v13  ;;  %v1392_v13 = vld [vmem:[%s1951_s4 + $0x58] sm:$0xff] }
  0x3f   :  { %214 = vmatpush.msrb.mxu1 %v1167_v14  ;;  %241 = vmatpush.msrb.mxu2 %v1167_v14 }
  0x40   :  { %188 = vmatpush.msrb.mxu0 %v1176_v15  ;;  %268 = vmatpush.msrb.mxu3 %v1167_v14  ;;  %v281_v14 = vld [vmem:[%s1949_s2 + $0x8] sm:$0xff] }
  0x41   :  { %215 = vmatpush.msrb.mxu1 %v1176_v15  ;;  %242 = vmatpush.msrb.mxu2 %v1176_v15 }
  0x42   :  { %269 = vmatpush.msrb.mxu3 %v1176_v15  ;;  %300 = vmatpush.msra.mxu0 %v295_v53  ;;  %v1403_v15 = vld [vmem:[%s1951_s4 + $0x50] sm:$0xff] }
  0x44   :  { %301 = vmatpush.msra.mxu0 %v294_v54 }
  0x46   :  { %302 = vmatpush.msra.mxu0 %v293_v55 }
  0x48   :  { %303 = vmatpush.msra.mxu0 %v292_v56 }
  0x4a   :  { %304 = vmatpush.msra.mxu0 %v291_v57 }
  0x4c   :  { %305 = vmatpush.msra.mxu0 %v290_v58 }
  0x4e   :  { %306 = vmatpush.msra.mxu0 %v289_v59 }
  0x50   :  { %307 = vmatpush.msra.mxu0 %v288_v2 }
  0x52   :  { %308 = vmatpush.msra.mxu0 %v287_v3 }
  0x54   :  { %309 = vmatpush.msra.mxu0 %v286_v4 }
  0x56   :  { %310 = vmatpush.msra.mxu0 %v285_v6 }
  0x58   :  { %311 = vmatpush.msra.mxu0 %v284_v8 }
  0x5a   :  { %312 = vmatpush.msra.mxu0 %v283_v10 }
  0x5c   :  { %313 = vmatpush.msra.mxu0 %v282_v12 }
  0x5e   :  { %314 = vmatpush.msra.mxu0 %v281_v14  ;;  %v573_v14 = vld [vmem:[%s1952_s5 + $0x70] sm:$0xff] }
  0x60   :  { %315 = vmatpush.msra.mxu0 %v280_v17  ;;  %v571_v17 = vld [vmem:[%s1952_s5 + $0x60] sm:$0xff] }
  0x9e   :  { %v74_v20 = vpop.f32.mrf.mxu0 }
  0x9f   :  { %v77_v21 = vadd.f32 %v74_v20, %v56_v19  ;;  %v1421_v19 = vld [vmem:[%s1951_s4 + $0x40] sm:$0xff]  ;;  %v1427_v20 = vld [vmem:[%s1951_s4 + $0x38] sm:$0xff] }
  0xa1   :  { %913 = vtanh.f32 %v77_v21  ;;  %v1436_v21 = vld [vmem:[%s1951_s4 + $0x30] sm:$0xff] }
  0xa7   :  { %v914_v22 = vpop.eup %913 }
  0xa8   :  { %80 = vst.msk [vmem:[#allocation2] sm:$0x3] %vm79_vm1, %v914_v22  ;;  %104 = vmatmul.f32.vlgmr.msra.gmra.mxu1 %v914_v22 }
  0xa9   :  { %82 = vst.msk [vmem:[#allocation2 + $0xe] sm:$0x3] %vm81_vm2, %v914_v22  ;;  %344 = vmatpush.msra.mxu1 %v1349_v5  ;;  %v1449_v22 = vld [vmem:[%s1951_s4 + $0x28] sm:$0xff] }
  0xab   :  { %345 = vmatpush.msra.mxu1 %v1359_v7 }
  0xad   :  { %346 = vmatpush.msra.mxu1 %v1370_v9 }
  0xaf   :  { %347 = vmatpush.msra.mxu1 %v1381_v11 }
  0xb1   :  { %348 = vmatpush.msra.mxu1 %v1392_v13 }
  0xb3   :  { %349 = vmatpush.msra.mxu1 %v1403_v15 }
  0xb5   :  { %350 = vmatpush.msra.mxu1 %v1414_v18 }
  0xb7   :  { %351 = vmatpush.msra.mxu1 %v1421_v19 }
  0xb9   :  { %352 = vmatpush.msra.mxu1 %v1427_v20 }
  0xbb   :  { %353 = vmatpush.msra.mxu1 %v1436_v21 }
  0xbd   :  { %354 = vmatpush.msra.mxu1 %v1449_v22 }
 0x125   :  { %v105_v26 = vpop.f32.mrf.mxu1 }
 0x126   :  { %v108_v27 = vadd.f32 %v105_v26, %v87_v25  ;;  %v1463_v25 = vld [vmem:[%s1951_s4 + $0x20] sm:$0xff]  ;;  %v1469_v26 = vld [vmem:[%s1951_s4 + $0x18] sm:$0xff] }
 0x127   :  { %355 = vmatpush.msra.mxu1 %v1463_v25 }
 0x128   :  { %915 = vtanh.f32 %v108_v27  ;;  %v253_v27 = vsel %vm55_vm0, %v907_v23, %v252_v24 }
 0x129   :  { %356 = vmatpush.msra.mxu1 %v1469_v26 }
 0x12e   :  { %v916_v28 = vpop.eup %915 }
 0x12f   :  { %110 = vst.msk [vmem:[#allocation2 + $0x2] sm:$0x3] %vm79_vm1, %v916_v28  ;;  %133 = vmatmul.f32.vlgmr.msra.gmra.mxu2 %v916_v28 }
 0x130   :  { %111 = vst.msk [vmem:[#allocation2 + $0xc] sm:$0x3] %vm81_vm2, %v916_v28  ;;  %371 = vmatpush.msra.mxu2 %v1349_v5  ;;  %v1479_v28 = vld [vmem:[%s1951_s4 + $0x10] sm:$0xff] }
 0x131   :  { %357 = vmatpush.msra.mxu1 %v1479_v28 }
 0x132   :  { %372 = vmatpush.msra.mxu2 %v1359_v7 }
 0x133   :  { %358 = vmatpush.msra.mxu1 %v1488_v30 }
 0x134   :  { %373 = vmatpush.msra.mxu2 %v1370_v9 }
 0x136   :  { %374 = vmatpush.msra.mxu2 %v1381_v11 }
 0x138   :  { %375 = vmatpush.msra.mxu2 %v1392_v13 }
 0x13a   :  { %376 = vmatpush.msra.mxu2 %v1403_v15 }
 0x13c   :  { %377 = vmatpush.msra.mxu2 %v1414_v18 }
 0x13e   :  { %378 = vmatpush.msra.mxu2 %v1421_v19 }
 0x140   :  { %379 = vmatpush.msra.mxu2 %v1427_v20 }
 0x142   :  { %380 = vmatpush.msra.mxu2 %v1436_v21 }
 0x144   :  { %381 = vmatpush.msra.mxu2 %v1449_v22 }
 0x146   :  { %382 = vmatpush.msra.mxu2 %v1463_v25 }
 0x148   :  { %383 = vmatpush.msra.mxu2 %v1469_v26 }
 0x14a   :  { %384 = vmatpush.msra.mxu2 %v1479_v28 }
 0x14c   :  { %385 = vmatpush.msra.mxu2 %v1488_v30 }
 0x1b2   :  { %v134_v32 = vpop.f32.mrf.mxu2 }
 0x1b3   :  { %v137_v33 = vadd.f32 %v134_v32, %v116_v31  ;;  %v1497_v32 = vld [vmem:[%s1951_s4] sm:$0xff] }
 0x1b4   :  { %359 = vmatpush.msra.mxu1 %v1497_v32  ;;  %386 = vmatpush.msra.mxu2 %v1497_v32 }
 0x1b5   :  { %917 = vtanh.f32 %v137_v33 }
 0x1bb   :  { %v918_v34 = vpop.eup %917 }
 0x1bc   :  { %139 = vst.msk [vmem:[#allocation2 + $0x4] sm:$0x3] %vm79_vm1, %v918_v34  ;;  %162 = vmatmul.f32.vlgmr.msra.gmra.mxu3 %v918_v34 }
 0x1bd   :  { %140 = vst.msk [vmem:[#allocation2 + $0xa] sm:$0x3] %vm81_vm2, %v918_v34  ;;  %398 = vmatpush.msra.mxu3 %v1349_v5 }
 0x1bf   :  { %399 = vmatpush.msra.mxu3 %v1359_v7 }
 0x1c1   :  { %400 = vmatpush.msra.mxu3 %v1370_v9 }
 0x1c3   :  { %401 = vmatpush.msra.mxu3 %v1381_v11 }
 0x1c5   :  { %402 = vmatpush.msra.mxu3 %v1392_v13 }
 0x1c7   :  { %403 = vmatpush.msra.mxu3 %v1403_v15 }
 0x1c9   :  { %404 = vmatpush.msra.mxu3 %v1414_v18 }
 0x1cb   :  { %405 = vmatpush.msra.mxu3 %v1421_v19 }
 0x1cd   :  { %406 = vmatpush.msra.mxu3 %v1427_v20 }
 0x1cf   :  { %407 = vmatpush.msra.mxu3 %v1436_v21 }
 0x1d1   :  { %408 = vmatpush.msra.mxu3 %v1449_v22 }
 0x1d3   :  { %409 = vmatpush.msra.mxu3 %v1463_v25 }
 0x1d5   :  { %410 = vmatpush.msra.mxu3 %v1469_v26 }
 0x1d7   :  { %411 = vmatpush.msra.mxu3 %v1479_v28 }
 0x1d9   :  { %412 = vmatpush.msra.mxu3 %v1488_v30 }
 0x1db   :  { %413 = vmatpush.msra.mxu3 %v1497_v32 }
 0x23f   :  { %v163_v38 = vpop.f32.mrf.mxu3 }
 0x240   :  { %v166_v39 = vadd.f32 %v163_v38, %v145_v37 }
 0x242   :  { %919 = vtanh.f32 %v166_v39 }
 0x248   :  { %v920_v40 = vpop.eup %919 }
 0x249   :  { %168 = vst.msk [vmem:[#allocation2 + $0x6] sm:$0x3] %vm79_vm1, %v920_v40  ;;  %189 = vmatmul.f32.vlgmr.msrb.gmra.mxu0 %v920_v40 }
 0x24a   :  { %169 = vst.msk [vmem:[#allocation2 + $0x8] sm:$0x3] %vm81_vm2, %v920_v40  ;;  %425 = vmatpush.msrb.mxu0 %v1349_v5 }
 0x24c   :  { %426 = vmatpush.msrb.mxu0 %v1359_v7 }
 0x24e   :  { %427 = vmatpush.msrb.mxu0 %v1370_v9 }
 0x250   :  { %428 = vmatpush.msrb.mxu0 %v1381_v11 }
 0x252   :  { %429 = vmatpush.msrb.mxu0 %v1392_v13 }
 0x254   :  { %430 = vmatpush.msrb.mxu0 %v1403_v15 }
 0x256   :  { %431 = vmatpush.msrb.mxu0 %v1414_v18 }
 0x258   :  { %432 = vmatpush.msrb.mxu0 %v1421_v19 }
 0x25a   :  { %433 = vmatpush.msrb.mxu0 %v1427_v20 }
 0x25c   :  { %434 = vmatpush.msrb.mxu0 %v1436_v21 }
 0x25e   :  { %435 = vmatpush.msrb.mxu0 %v1449_v22 }
 0x260   :  { %436 = vmatpush.msrb.mxu0 %v1463_v25 }
 0x262   :  { %437 = vmatpush.msrb.mxu0 %v1469_v26 }
 0x264   :  { %438 = vmatpush.msrb.mxu0 %v1479_v28 }
 0x266   :  { %439 = vmatpush.msrb.mxu0 %v1488_v30 }
 0x268   :  { %440 = vmatpush.msrb.mxu0 %v1497_v32 }
 0x2c6   :  { %v190_v44 = vpop.f32.mrf.mxu0 }
 0x2c7   :  { %v193_v45 = vadd.f32 %v190_v44, %v172_v43 }
 0x2c9   :  { %921 = vtanh.f32 %v193_v45 }
 0x2cf   :  { %v922_v46 = vpop.eup %921 }
 0x2d0   :  { %195 = vst.msk [vmem:[#allocation2 + $0x8] sm:$0x3] %vm79_vm1, %v922_v46  ;;  %216 = vmatmul.f32.vlgmr.msrb.gmra.mxu1 %v922_v46 }
 0x2d1   :  { %196 = vst.msk [vmem:[#allocation2 + $0x6] sm:$0x3] %vm81_vm2, %v922_v46  ;;  %452 = vmatpush.msrb.mxu1 %v1349_v5 }
 0x2d3   :  { %453 = vmatpush.msrb.mxu1 %v1359_v7 }
 0x2d5   :  { %454 = vmatpush.msrb.mxu1 %v1370_v9 }
 0x2d7   :  { %455 = vmatpush.msrb.mxu1 %v1381_v11 }
 0x2d8   :  { %360 = vmatmul.f32.vlgmr.msra.gmra.mxu1 %v987_v16 }
 0x2d9   :  { %456 = vmatpush.msrb.mxu1 %v1392_v13 }
 0x2db   :  { %457 = vmatpush.msrb.mxu1 %v1403_v15 }
 0x2dd   :  { %458 = vmatpush.msrb.mxu1 %v1414_v18 }
 0x2df   :  { %459 = vmatpush.msrb.mxu1 %v1421_v19 }
 0x2e1   :  { %460 = vmatpush.msrb.mxu1 %v1427_v20 }
 0x2e3   :  { %461 = vmatpush.msrb.mxu1 %v1436_v21 }
 0x2e5   :  { %462 = vmatpush.msrb.mxu1 %v1449_v22 }
 0x2e7   :  { %463 = vmatpush.msrb.mxu1 %v1463_v25 }
 0x2e9   :  { %464 = vmatpush.msrb.mxu1 %v1469_v26 }
 0x2eb   :  { %465 = vmatpush.msrb.mxu1 %v1479_v28 }
 0x2ed   :  { %466 = vmatpush.msrb.mxu1 %v1488_v30 }
 0x2ef   :  { %467 = vmatpush.msrb.mxu1 %v1497_v32 }
 0x34d   :  { %v217_v50 = vpop.f32.mrf.mxu1 }
 0x34e   :  { %v220_v51 = vadd.f32 %v217_v50, %v199_v49 }
 0x350   :  { %923 = vtanh.f32 %v220_v51 }
 0x355   :  { %v361_v41 = vpop.f32.mrf.mxu1 }
 0x356   :  { %v924_v52 = vpop.eup %923 }
 0x357   :  { %222 = vst.msk [vmem:[#allocation2 + $0xa] sm:$0x3] %vm79_vm1, %v924_v52  ;;  %243 = vmatmul.f32.vlgmr.msrb.gmra.mxu2 %v924_v52 }
 0x358   :  { %223 = vst.msk [vmem:[#allocation2 + $0x4] sm:$0x3] %vm81_vm2, %v924_v52  ;;  %479 = vmatpush.msrb.mxu2 %v1349_v5 }
 0x35a   :  { %480 = vmatpush.msrb.mxu2 %v1359_v7 }
 0x35c   :  { %481 = vmatpush.msrb.mxu2 %v1370_v9 }
 0x35e   :  { %482 = vmatpush.msrb.mxu2 %v1381_v11 }
 0x360   :  { %483 = vmatpush.msrb.mxu2 %v1392_v13 }
 0x362   :  { %484 = vmatpush.msrb.mxu2 %v1403_v15 }
 0x364   :  { %485 = vmatpush.msrb.mxu2 %v1414_v18 }
 0x366   :  { %486 = vmatpush.msrb.mxu2 %v1421_v19 }
 0x368   :  { %487 = vmatpush.msrb.mxu2 %v1427_v20 }
 0x36a   :  { %488 = vmatpush.msrb.mxu2 %v1436_v21 }
 0x36c   :  { %489 = vmatpush.msrb.mxu2 %v1449_v22 }
 0x36e   :  { %490 = vmatpush.msrb.mxu2 %v1463_v25 }
 0x370   :  { %491 = vmatpush.msrb.mxu2 %v1469_v26 }
 0x372   :  { %492 = vmatpush.msrb.mxu2 %v1479_v28 }
 0x374   :  { %493 = vmatpush.msrb.mxu2 %v1488_v30 }
 0x376   :  { %494 = vmatpush.msrb.mxu2 %v1497_v32 }
 0x3da   :  { %v244_v63 = vpop.f32.mrf.mxu2 }
 0x3db   :  { %v247_v0 = vadd.f32 %v244_v63, %v226_v62 }
 0x3dd   :  { %925 = vtanh.f32 %v247_v0 }
 0x3e3   :  { %v926_v1 = vpop.eup %925 }
 0x3e4   :  { %249 = vst.msk [vmem:[#allocation2 + $0xc] sm:$0x3] %vm79_vm1, %v926_v1  ;;  %270 = vmatmul.f32.vlgmr.msrb.gmra.mxu3 %v926_v1 }
 0x3e5   :  { %250 = vst.msk [vmem:[#allocation2 + $0x2] sm:$0x3] %vm81_vm2, %v926_v1  ;;  %506 = vmatpush.msrb.mxu3 %v1349_v5 }
 0x3e7   :  { %507 = vmatpush.msrb.mxu3 %v1359_v7 }
 0x3e9   :  { %508 = vmatpush.msrb.mxu3 %v1370_v9 }
 0x3eb   :  { %509 = vmatpush.msrb.mxu3 %v1381_v11 }
 0x3ed   :  { %510 = vmatpush.msrb.mxu3 %v1392_v13 }
 0x3ef   :  { %511 = vmatpush.msrb.mxu3 %v1403_v15 }
 0x3f1   :  { %512 = vmatpush.msrb.mxu3 %v1414_v18 }
 0x3f3   :  { %513 = vmatpush.msrb.mxu3 %v1421_v19 }
 0x3f5   :  { %514 = vmatpush.msrb.mxu3 %v1427_v20 }
 0x3f7   :  { %515 = vmatpush.msrb.mxu3 %v1436_v21 }
 0x3f9   :  { %516 = vmatpush.msrb.mxu3 %v1449_v22 }
 0x3fb   :  { %517 = vmatpush.msrb.mxu3 %v1463_v25 }
 0x3fd   :  { %518 = vmatpush.msrb.mxu3 %v1469_v26 }
 0x3ff   :  { %519 = vmatpush.msrb.mxu3 %v1479_v28 }
 0x401   :  { %520 = vmatpush.msrb.mxu3 %v1488_v30 }
 0x403   :  { %521 = vmatpush.msrb.mxu3 %v1497_v32 }
 0x467   :  { %v271_v29 = vpop.f32.mrf.mxu3 }
 0x468   :  { %v274_v31 = vadd.f32 %v271_v29, %v253_v27  ;;  %v1630_v27 = vld [vmem:[%s1954_s7 + $0x78] sm:$0xff]  ;;  %v1640_v29 = vld [vmem:[%s1954_s7 + $0x70] sm:$0xff] }
 0x46a   :  { %927 = vtanh.f32 %v274_v31  ;;  %v1651_v31 = vld [vmem:[%s1954_s7 + $0x68] sm:$0xff] }
 0x470   :  { %v928_v33 = vpop.eup %927 }
 0x471   :  { %276 = vst.msk [vmem:[#allocation2 + $0xe] sm:$0x3] %vm79_vm1, %v928_v33 }
 0x472   :  { %277 = vst.msk [vmem:[#allocation2] sm:$0x3] %vm81_vm2, %v928_v33  ;;  %v1662_v33 = vld [vmem:[%s1954_s7 + $0x60] sm:$0xff] }
 0x478   :  { %v279_v35 = vld [vmem:[#allocation2 + $0x8] sm:$0xff] }
 0x479   :  { %v278_v34 = vld [vmem:[#allocation2] sm:$0xff] }
 0x47a   :  { %316 = vmatmul.f32.vlgmr.msra.gmra.mxu0 %v278_v34  ;;  %v564_v34 = vld [vmem:[%s1952_s5 + $0x28] sm:$0xff] }
 0x47b   :  { %533 = vmatpush.msra.mxu0 %v1349_v5 }
 0x47d   :  { %534 = vmatpush.msra.mxu0 %v1359_v7 }
 0x47f   :  { %535 = vmatpush.msra.mxu0 %v1370_v9 }
 0x481   :  { %536 = vmatpush.msra.mxu0 %v1381_v11 }
 0x482   :  { %319 = vmatmul.f32.gmra.mxu0 %v279_v35  ;;  %v1673_v35 = vld [vmem:[%s1954_s7 + $0x58] sm:$0xff] }
 0x483   :  { %537 = vmatpush.msra.mxu0 %v1392_v13  ;;  %v574_v13 = vld [vmem:[%s1952_s5 + $0x78] sm:$0xff] }
 0x484   :  { %579 = vmatpush.msra.mxu1 %v574_v13 }
 0x485   :  { %538 = vmatpush.msra.mxu0 %v1403_v15  ;;  %v572_v15 = vld [vmem:[%s1952_s5 + $0x68] sm:$0xff] }
 0x486   :  { %580 = vmatpush.msra.mxu1 %v573_v14 }
 0x487   :  { %539 = vmatpush.msra.mxu0 %v1414_v18  ;;  %v570_v18 = vld [vmem:[%s1952_s5 + $0x58] sm:$0xff] }
 0x488   :  { %581 = vmatpush.msra.mxu1 %v572_v15 }
 0x489   :  { %540 = vmatpush.msra.mxu0 %v1421_v19  ;;  %v569_v19 = vld [vmem:[%s1952_s5 + $0x50] sm:$0xff] }
 0x48a   :  { %582 = vmatpush.msra.mxu1 %v571_v17 }
 0x48b   :  { %541 = vmatpush.msra.mxu0 %v1427_v20  ;;  %v568_v20 = vld [vmem:[%s1952_s5 + $0x48] sm:$0xff] }
 0x48c   :  { %583 = vmatpush.msra.mxu1 %v570_v18 }
 0x48d   :  { %542 = vmatpush.msra.mxu0 %v1436_v21 }
 0x48e   :  { %584 = vmatpush.msra.mxu1 %v569_v19 }
 0x48f   :  { %543 = vmatpush.msra.mxu0 %v1449_v22 }
 0x490   :  { %585 = vmatpush.msra.mxu1 %v568_v20 }
 0x491   :  { %544 = vmatpush.msra.mxu0 %v1463_v25 }
 0x493   :  { %545 = vmatpush.msra.mxu0 %v1469_v26 }
 0x495   :  { %546 = vmatpush.msra.mxu0 %v1479_v28  ;;  %v567_v28 = vld [vmem:[%s1952_s5 + $0x40] sm:$0xff] }
 0x496   :  { %586 = vmatpush.msra.mxu1 %v567_v28 }
 0x497   :  { %547 = vmatpush.msra.mxu0 %v1488_v30  ;;  %v566_v30 = vld [vmem:[%s1952_s5 + $0x38] sm:$0xff] }
 0x498   :  { %587 = vmatpush.msra.mxu1 %v566_v30 }
 0x499   :  { %548 = vmatpush.msra.mxu0 %v1497_v32  ;;  %v565_v32 = vld [vmem:[%s1952_s5 + $0x30] sm:$0xff] }
 0x49a   :  { %588 = vmatpush.msra.mxu1 %v565_v32 }
 0x49c   :  { %589 = vmatpush.msra.mxu1 %v564_v34 }
 0x4f7   :  { %v317_v37 = vpop.f32.mrf.mxu0 }
 0x4f8   :  { %v318_v38 = vadd.f32 %v910_v36, %v317_v37  ;;  %v1684_v37 = vld [vmem:[%s1954_s7 + $0x50] sm:$0xff] }
 0x4fa   :  { %323 = vst [vmem:[#allocation3] sm:$0xff] %v318_v38  ;;  %v562_v38 = vld [vmem:[%s1952_s5 + $0x18] sm:$0xff] }
 0x4ff   :  { %v320_v39 = vpop.f32.mrf.mxu0 }
 0x500   :  { %v321_v40 = vadd.f32 %v910_v36, %v320_v39  ;;  %v563_v36 = vld [vmem:[%s1952_s5 + $0x20] sm:$0xff]  ;;  %v1692_v39 = vld [vmem:[%s1954_s7 + $0x48] sm:$0xff] }
 0x501   :  { %v341_v42 = vld [vmem:[#allocation3] sm:$0x3]  ;;  %v368_v48 = vld [vmem:[#allocation3 + $0x2] sm:$0x3]  ;;  %v395_v54 = vld [vmem:[#allocation3 + $0x4] sm:$0x3]  ;;  %590 = vmatpush.msra.mxu1 %v563_v36 }
 0x502   :  { %324 = vst [vmem:[#allocation3 + $0x8] sm:$0xff] %v321_v40  ;;  %v422_v60 = vld [vmem:[#allocation3 + $0x6] sm:$0x3]  ;;  %v477_v8 = vld [vmem:[#allocation3 + $0x4] sm:$0x3] }
 0x503   :  { %v450_v2 = vld [vmem:[#allocation3 + $0x6] sm:$0x3]  ;;  %v504_v22 = vld [vmem:[#allocation3 + $0x2] sm:$0x3]  ;;  %591 = vmatpush.msra.mxu1 %v562_v38 }
 0x504   :  { %v561_v40 = vld [vmem:[%s1952_s5 + $0x10] sm:$0xff] }
 0x505   :  { %592 = vmatpush.msra.mxu1 %v561_v40  ;;  %v851_v38 = vld [vmem:[%s1955_s8 + $0x70] sm:$0xff]  ;;  %v849_v40 = vld [vmem:[%s1955_s8 + $0x60] sm:$0xff] }
 0x509   :  { %v342_v43 = vld [vmem:[#allocation3 + $0xe] sm:$0x3]  ;;  %v369_v47 = vld [vmem:[#allocation3 + $0xc] sm:$0x3]  ;;  %v396_v53 = vld [vmem:[#allocation3 + $0xa] sm:$0x3] }
 0x50a   :  { %v343_v44 = vsel %vm55_vm0, %v341_v42, %v342_v43  ;;  %v370_v49 = vsel %vm55_vm0, %v368_v48, %v369_v47  ;;  %v397_v55 = vsel %vm55_vm0, %v395_v54, %v396_v53  ;;  %v423_v59 = vld [vmem:[#allocation3 + $0x8] sm:$0x3]  ;;  %v476_v7 = vld [vmem:[#allocation3 + $0xa] sm:$0x3]  ;;  %v503_v21 = vld [vmem:[#allocation3 + $0xc] sm:$0x3] }
 0x50b   :  { %v364_v45 = vadd.f32 %v361_v41, %v343_v44  ;;  %v424_v61 = vsel %vm55_vm0, %v422_v60, %v423_v59  ;;  %v449_v1 = vld [vmem:[#allocation3 + $0x8] sm:$0x3]  ;;  %v478_v9 = vsel %vm55_vm0, %v476_v7, %v477_v8  ;;  %v505_v23 = vsel %vm55_vm0, %v503_v21, %v504_v22  ;;  %v1703_v41 = vld [vmem:[%s1954_s7 + $0x40] sm:$0xff]  ;;  %v560_v42 = vld [vmem:[%s1952_s5 + $0x8] sm:$0xff] }
 0x50c   :  { %v451_v3 = vsel %vm55_vm0, %v449_v1, %v450_v2  ;;  %v1714_v43 = vld [vmem:[%s1954_s7 + $0x38] sm:$0xff]  ;;  %v559_v44 = vld [vmem:[%s1952_s5] sm:$0xff]  ;;  %593 = vmatpush.msra.mxu1 %v560_v42  ;;  %v531_v53 = vld [vmem:[#allocation3] sm:$0x3] }
 0x50d   :  { %929 = vtanh.f32 %v364_v45  ;;  %v1728_v45 = vld [vmem:[%s1954_s7 + $0x30] sm:$0xff]  ;;  %v1741_v47 = vld [vmem:[%s1954_s7 + $0x20] sm:$0xff]  ;;  %v1750_v48 = vld [vmem:[%s1954_s7 + $0x18] sm:$0xff] }
 0x50e   :  { %594 = vmatpush.msra.mxu1 %v559_v44  ;;  %v911_v59 = vld [vmem:[%s1953_s6] ss:$0 sm:$0xff]  ;;  %v847_v42 = vld [vmem:[%s1955_s8 + $0x50] sm:$0xff] }
 0x513   :  { %v930_v46 = vpop.eup %929 }
 0x514   :  { %366 = vst.msk [vmem:[#allocation2] sm:$0x3] %vm79_vm1, %v930_v46  ;;  %387 = vmatmul.f32.vlgmr.msra.gmra.mxu2 %v930_v46 }
 0x515   :  { %367 = vst.msk [vmem:[#allocation2 + $0xe] sm:$0x3] %vm81_vm2, %v930_v46  ;;  %623 = vmatpush.msra.mxu2 %v1630_v27  ;;  %v1733_v46 = vld [vmem:[%s1954_s7 + $0x28] sm:$0xff] }
 0x517   :  { %624 = vmatpush.msra.mxu2 %v1640_v29 }
 0x519   :  { %625 = vmatpush.msra.mxu2 %v1651_v31 }
 0x51b   :  { %626 = vmatpush.msra.mxu2 %v1662_v33 }
 0x51d   :  { %627 = vmatpush.msra.mxu2 %v1673_v35 }
 0x51f   :  { %628 = vmatpush.msra.mxu2 %v1684_v37 }
 0x521   :  { %629 = vmatpush.msra.mxu2 %v1692_v39 }
 0x523   :  { %630 = vmatpush.msra.mxu2 %v1703_v41 }
 0x525   :  { %631 = vmatpush.msra.mxu2 %v1714_v43 }
 0x527   :  { %632 = vmatpush.msra.mxu2 %v1728_v45 }
 0x529   :  { %633 = vmatpush.msra.mxu2 %v1733_v46 }
 0x52b   :  { %634 = vmatpush.msra.mxu2 %v1741_v47 }
 0x52d   :  { %635 = vmatpush.msra.mxu2 %v1750_v48 }
 0x597   :  { %v388_v50 = vpop.f32.mrf.mxu2 }
 0x598   :  { %v391_v51 = vadd.f32 %v388_v50, %v370_v49  ;;  %v1763_v49 = vld [vmem:[%s1954_s7 + $0x10] sm:$0xff]  ;;  %v1768_v50 = vld [vmem:[%s1954_s7 + $0x8] sm:$0xff] }
 0x599   :  { %636 = vmatpush.msra.mxu2 %v1763_v49 }
 0x59a   :  { %931 = vtanh.f32 %v391_v51  ;;  %v530_v51 = vld [vmem:[#allocation3 + $0xe] sm:$0x3] }
 0x59b   :  { %637 = vmatpush.msra.mxu2 %v1768_v50  ;;  %v532_v54 = vsel %vm55_vm0, %v530_v51, %v531_v53  ;;  %v844_v51 = vld [vmem:[%s1955_s8 + $0x38] sm:$0xff]  ;;  %v842_v53 = vld [vmem:[%s1955_s8 + $0x28] sm:$0xff] }
 0x5a0   :  { %v932_v52 = vpop.eup %931 }
 0x5a1   :  { %393 = vst.msk [vmem:[#allocation2 + $0x2] sm:$0x3] %vm79_vm1, %v932_v52  ;;  %414 = vmatmul.f32.vlgmr.msra.gmra.mxu3 %v932_v52 }
 0x5a2   :  { %394 = vst.msk [vmem:[#allocation2 + $0xc] sm:$0x3] %vm81_vm2, %v932_v52  ;;  %650 = vmatpush.msra.mxu3 %v1630_v27  ;;  %v1777_v52 = vld [vmem:[%s1954_s7] sm:$0xff] }
 0x5a3   :  { %638 = vmatpush.msra.mxu2 %v1777_v52 }
 0x5a4   :  { %651 = vmatpush.msra.mxu3 %v1640_v29 }
 0x5a6   :  { %652 = vmatpush.msra.mxu3 %v1651_v31 }
 0x5a8   :  { %653 = vmatpush.msra.mxu3 %v1662_v33 }
 0x5aa   :  { %654 = vmatpush.msra.mxu3 %v1673_v35 }
 0x5ac   :  { %655 = vmatpush.msra.mxu3 %v1684_v37 }
 0x5ae   :  { %656 = vmatpush.msra.mxu3 %v1692_v39 }
 0x5b0   :  { %657 = vmatpush.msra.mxu3 %v1703_v41 }
 0x5b2   :  { %658 = vmatpush.msra.mxu3 %v1714_v43 }
 0x5b4   :  { %659 = vmatpush.msra.mxu3 %v1728_v45 }
 0x5b6   :  { %660 = vmatpush.msra.mxu3 %v1733_v46 }
 0x5b8   :  { %661 = vmatpush.msra.mxu3 %v1741_v47 }
 0x5ba   :  { %662 = vmatpush.msra.mxu3 %v1750_v48 }
 0x5bc   :  { %663 = vmatpush.msra.mxu3 %v1763_v49 }
 0x5be   :  { %664 = vmatpush.msra.mxu3 %v1768_v50 }
 0x5c0   :  { %665 = vmatpush.msra.mxu3 %v1777_v52 }
 0x624   :  { %v415_v56 = vpop.f32.mrf.mxu3 }
 0x625   :  { %v418_v57 = vadd.f32 %v415_v56, %v397_v55 }
 0x627   :  { %933 = vtanh.f32 %v418_v57 }
 0x62d   :  { %v934_v58 = vpop.eup %933 }
 0x62e   :  { %420 = vst.msk [vmem:[#allocation2 + $0x4] sm:$0x3] %vm79_vm1, %v934_v58  ;;  %441 = vmatmul.f32.vlgmr.msrb.gmra.mxu0 %v934_v58 }
 0x62f   :  { %421 = vst.msk [vmem:[#allocation2 + $0xa] sm:$0x3] %vm81_vm2, %v934_v58  ;;  %677 = vmatpush.msrb.mxu0 %v1630_v27 }
 0x631   :  { %678 = vmatpush.msrb.mxu0 %v1640_v29 }
 0x633   :  { %679 = vmatpush.msrb.mxu0 %v1651_v31 }
 0x635   :  { %680 = vmatpush.msrb.mxu0 %v1662_v33 }
 0x637   :  { %681 = vmatpush.msrb.mxu0 %v1673_v35 }
 0x639   :  { %682 = vmatpush.msrb.mxu0 %v1684_v37 }
 0x63b   :  { %683 = vmatpush.msrb.mxu0 %v1692_v39 }
 0x63d   :  { %684 = vmatpush.msrb.mxu0 %v1703_v41 }
 0x63f   :  { %685 = vmatpush.msrb.mxu0 %v1714_v43 }
 0x641   :  { %686 = vmatpush.msrb.mxu0 %v1728_v45 }
 0x643   :  { %687 = vmatpush.msrb.mxu0 %v1733_v46 }
 0x645   :  { %688 = vmatpush.msrb.mxu0 %v1741_v47 }
 0x647   :  { %689 = vmatpush.msrb.mxu0 %v1750_v48 }
 0x649   :  { %690 = vmatpush.msrb.mxu0 %v1763_v49 }
 0x64b   :  { %691 = vmatpush.msrb.mxu0 %v1768_v50 }
 0x64d   :  { %692 = vmatpush.msrb.mxu0 %v1777_v52 }
 0x6ab   :  { %v442_v62 = vpop.f32.mrf.mxu0 }
 0x6ac   :  { %v445_v63 = vadd.f32 %v442_v62, %v424_v61 }
 0x6ae   :  { %935 = vtanh.f32 %v445_v63 }
 0x6b4   :  { %v936_v0 = vpop.eup %935 }
 0x6b5   :  { %447 = vst.msk [vmem:[#allocation2 + $0x6] sm:$0x3] %vm79_vm1, %v936_v0  ;;  %468 = vmatmul.f32.vlgmr.msrb.gmra.mxu1 %v936_v0 }
 0x6b6   :  { %448 = vst.msk [vmem:[#allocation2 + $0x8] sm:$0x3] %vm81_vm2, %v936_v0  ;;  %704 = vmatpush.msrb.mxu1 %v1630_v27 }
 0x6b8   :  { %705 = vmatpush.msrb.mxu1 %v1640_v29 }
 0x6ba   :  { %706 = vmatpush.msrb.mxu1 %v1651_v31 }
 0x6bc   :  { %707 = vmatpush.msrb.mxu1 %v1662_v33 }
 0x6be   :  { %708 = vmatpush.msrb.mxu1 %v1673_v35 }
 0x6c0   :  { %709 = vmatpush.msrb.mxu1 %v1684_v37 }
 0x6c2   :  { %710 = vmatpush.msrb.mxu1 %v1692_v39 }
 0x6c4   :  { %711 = vmatpush.msrb.mxu1 %v1703_v41 }
 0x6c6   :  { %712 = vmatpush.msrb.mxu1 %v1714_v43 }
 0x6c8   :  { %713 = vmatpush.msrb.mxu1 %v1728_v45 }
 0x6ca   :  { %714 = vmatpush.msrb.mxu1 %v1733_v46 }
 0x6cc   :  { %715 = vmatpush.msrb.mxu1 %v1741_v47 }
 0x6ce   :  { %716 = vmatpush.msrb.mxu1 %v1750_v48 }
 0x6d0   :  { %717 = vmatpush.msrb.mxu1 %v1763_v49 }
 0x6d2   :  { %718 = vmatpush.msrb.mxu1 %v1768_v50 }
 0x6d4   :  { %719 = vmatpush.msrb.mxu1 %v1777_v52 }
 0x732   :  { %v469_v4 = vpop.f32.mrf.mxu1 }
 0x733   :  { %v472_v5 = vadd.f32 %v469_v4, %v451_v3 }
 0x735   :  { %937 = vtanh.f32 %v472_v5 }
 0x73b   :  { %v938_v6 = vpop.eup %937 }
 0x73c   :  { %474 = vst.msk [vmem:[#allocation2 + $0x8] sm:$0x3] %vm79_vm1, %v938_v6  ;;  %495 = vmatmul.f32.vlgmr.msrb.gmra.mxu2 %v938_v6 }
 0x73d   :  { %475 = vst.msk [vmem:[#allocation2 + $0x6] sm:$0x3] %vm81_vm2, %v938_v6  ;;  %731 = vmatpush.msrb.mxu2 %v1630_v27 }
 0x73f   :  { %732 = vmatpush.msrb.mxu2 %v1640_v29 }
 0x741   :  { %733 = vmatpush.msrb.mxu2 %v1651_v31 }
 0x743   :  { %734 = vmatpush.msrb.mxu2 %v1662_v33 }
 0x744   :  { %639 = vmatmul.f32.vlgmr.msra.gmra.mxu2 %v987_v16 }
 0x745   :  { %735 = vmatpush.msrb.mxu2 %v1673_v35 }
 0x747   :  { %736 = vmatpush.msrb.mxu2 %v1684_v37 }
 0x749   :  { %737 = vmatpush.msrb.mxu2 %v1692_v39 }
 0x74b   :  { %738 = vmatpush.msrb.mxu2 %v1703_v41 }
 0x74d   :  { %739 = vmatpush.msrb.mxu2 %v1714_v43 }
 0x74f   :  { %740 = vmatpush.msrb.mxu2 %v1728_v45 }
 0x751   :  { %741 = vmatpush.msrb.mxu2 %v1733_v46 }
 0x753   :  { %742 = vmatpush.msrb.mxu2 %v1741_v47 }
 0x755   :  { %743 = vmatpush.msrb.mxu2 %v1750_v48 }
 0x757   :  { %744 = vmatpush.msrb.mxu2 %v1763_v49 }
 0x759   :  { %745 = vmatpush.msrb.mxu2 %v1768_v50 }
 0x75b   :  { %746 = vmatpush.msrb.mxu2 %v1777_v52 }
 0x7bf   :  { %v496_v10 = vpop.f32.mrf.mxu2 }
 0x7c0   :  { %v499_v11 = vadd.f32 %v496_v10, %v478_v9 }
 0x7c2   :  { %939 = vtanh.f32 %v499_v11 }
 0x7c7   :  { %v640_v0 = vpop.f32.mrf.mxu2 }
 0x7c8   :  { %v940_v12 = vpop.eup %939 }
 0x7c9   :  { %501 = vst.msk [vmem:[#allocation2 + $0xa] sm:$0x3] %vm79_vm1, %v940_v12  ;;  %522 = vmatmul.f32.vlgmr.msrb.gmra.mxu3 %v940_v12 }
 0x7ca   :  { %502 = vst.msk [vmem:[#allocation2 + $0x4] sm:$0x3] %vm81_vm2, %v940_v12  ;;  %758 = vmatpush.msrb.mxu3 %v1630_v27 }
 0x7cc   :  { %759 = vmatpush.msrb.mxu3 %v1640_v29 }
 0x7ce   :  { %760 = vmatpush.msrb.mxu3 %v1651_v31 }
 0x7d0   :  { %761 = vmatpush.msrb.mxu3 %v1662_v33 }
 0x7d2   :  { %762 = vmatpush.msrb.mxu3 %v1673_v35 }
 0x7d4   :  { %763 = vmatpush.msrb.mxu3 %v1684_v37 }
 0x7d6   :  { %764 = vmatpush.msrb.mxu3 %v1692_v39 }
 0x7d8   :  { %765 = vmatpush.msrb.mxu3 %v1703_v41 }
 0x7da   :  { %766 = vmatpush.msrb.mxu3 %v1714_v43 }
 0x7dc   :  { %767 = vmatpush.msrb.mxu3 %v1728_v45 }
 0x7de   :  { %768 = vmatpush.msrb.mxu3 %v1733_v46 }
 0x7e0   :  { %769 = vmatpush.msrb.mxu3 %v1741_v47 }
 0x7e2   :  { %770 = vmatpush.msrb.mxu3 %v1750_v48 }
 0x7e4   :  { %771 = vmatpush.msrb.mxu3 %v1763_v49 }
 0x7e6   :  { %772 = vmatpush.msrb.mxu3 %v1768_v50 }
 0x7e8   :  { %773 = vmatpush.msrb.mxu3 %v1777_v52 }
 0x84c   :  { %v523_v24 = vpop.f32.mrf.mxu3 }
 0x84d   :  { %v526_v25 = vadd.f32 %v523_v24, %v505_v23 }
 0x84f   :  { %941 = vtanh.f32 %v526_v25 }
 0x855   :  { %v942_v26 = vpop.eup %941 }
 0x856   :  { %528 = vst.msk [vmem:[#allocation2 + $0xc] sm:$0x3] %vm79_vm1, %v942_v26  ;;  %549 = vmatmul.f32.vlgmr.msra.gmra.mxu0 %v942_v26 }
 0x857   :  { %529 = vst.msk [vmem:[#allocation2 + $0x2] sm:$0x3] %vm81_vm2, %v942_v26  ;;  %785 = vmatpush.msra.mxu0 %v1630_v27 }
 0x859   :  { %786 = vmatpush.msra.mxu0 %v1640_v29 }
 0x85b   :  { %787 = vmatpush.msra.mxu0 %v1651_v31 }
 0x85d   :  { %788 = vmatpush.msra.mxu0 %v1662_v33 }
 0x85f   :  { %789 = vmatpush.msra.mxu0 %v1673_v35 }
 0x861   :  { %790 = vmatpush.msra.mxu0 %v1684_v37 }
 0x863   :  { %791 = vmatpush.msra.mxu0 %v1692_v39 }
 0x865   :  { %792 = vmatpush.msra.mxu0 %v1703_v41 }
 0x867   :  { %793 = vmatpush.msra.mxu0 %v1714_v43 }
 0x869   :  { %794 = vmatpush.msra.mxu0 %v1728_v45 }
 0x86b   :  { %795 = vmatpush.msra.mxu0 %v1733_v46 }
 0x86d   :  { %796 = vmatpush.msra.mxu0 %v1741_v47 }
 0x86f   :  { %797 = vmatpush.msra.mxu0 %v1750_v48 }
 0x871   :  { %798 = vmatpush.msra.mxu0 %v1763_v49 }
 0x873   :  { %799 = vmatpush.msra.mxu0 %v1768_v50 }
 0x875   :  { %800 = vmatpush.msra.mxu0 %v1777_v52 }
 0x8d3   :  { %v550_v55 = vpop.f32.mrf.mxu0 }
 0x8d4   :  { %v553_v56 = vadd.f32 %v550_v55, %v532_v54  ;;  %v841_v54 = vld [vmem:[%s1955_s8 + $0x20] sm:$0xff]  ;;  %v840_v55 = vld [vmem:[%s1955_s8 + $0x18] sm:$0xff] }
 0x8d6   :  { %943 = vtanh.f32 %v553_v56  ;;  %v839_v56 = vld [vmem:[%s1955_s8 + $0x10] sm:$0xff] }
 0x8dc   :  { %v944_v16 = vpop.eup %943 }
 0x8dd   :  { %555 = vst.msk [vmem:[#allocation2 + $0xe] sm:$0x3] %vm79_vm1, %v944_v16 }
 0x8de   :  { %556 = vst.msk [vmem:[#allocation2] sm:$0x3] %vm81_vm2, %v944_v16  ;;  %v838_v16 = vld [vmem:[%s1955_s8 + $0x8] sm:$0xff] }
 0x8e4   :  { %v558_v58 = vld [vmem:[#allocation2 + $0x8] sm:$0xff] }
 0x8e5   :  { %v557_v57 = vld [vmem:[#allocation2] sm:$0xff] }
 0x8e6   :  { %595 = vmatmul.f32.vlgmr.msra.gmra.mxu1 %v557_v57  ;;  %v837_v57 = vld [vmem:[%s1955_s8] sm:$0xff] }
 0x8e7   :  { %812 = vmatpush.msra.mxu1 %v1630_v27 }
 0x8e9   :  { %813 = vmatpush.msra.mxu1 %v1640_v29 }
 0x8eb   :  { %814 = vmatpush.msra.mxu1 %v1651_v31 }
 0x8ed   :  { %815 = vmatpush.msra.mxu1 %v1662_v33 }
 0x8ee   :  { %598 = vmatmul.f32.gmra.mxu1 %v558_v58 }
 0x8ef   :  { %816 = vmatpush.msra.mxu1 %v1673_v35 }
 0x8f1   :  { %817 = vmatpush.msra.mxu1 %v1684_v37  ;;  %v852_v37 = vld [vmem:[%s1955_s8 + $0x78] sm:$0xff] }
 0x8f2   :  { %857 = vmatpush.msra.mxu2 %v852_v37 }
 0x8f3   :  { %818 = vmatpush.msra.mxu1 %v1692_v39  ;;  %v850_v39 = vld [vmem:[%s1955_s8 + $0x68] sm:$0xff] }
 0x8f4   :  { %858 = vmatpush.msra.mxu2 %v851_v38 }
 0x8f5   :  { %819 = vmatpush.msra.mxu1 %v1703_v41  ;;  %v848_v41 = vld [vmem:[%s1955_s8 + $0x58] sm:$0xff] }
 0x8f6   :  { %859 = vmatpush.msra.mxu2 %v850_v39 }
 0x8f7   :  { %820 = vmatpush.msra.mxu1 %v1714_v43  ;;  %v846_v43 = vld [vmem:[%s1955_s8 + $0x48] sm:$0xff] }
 0x8f8   :  { %860 = vmatpush.msra.mxu2 %v849_v40 }
 0x8f9   :  { %821 = vmatpush.msra.mxu1 %v1728_v45 }
 0x8fa   :  { %861 = vmatpush.msra.mxu2 %v848_v41 }
 0x8fb   :  { %822 = vmatpush.msra.mxu1 %v1733_v46 }
 0x8fc   :  { %862 = vmatpush.msra.mxu2 %v847_v42 }
 0x8fd   :  { %823 = vmatpush.msra.mxu1 %v1741_v47 }
 0x8fe   :  { %863 = vmatpush.msra.mxu2 %v846_v43 }
 0x8ff   :  { %824 = vmatpush.msra.mxu1 %v1750_v48 }
 0x901   :  { %825 = vmatpush.msra.mxu1 %v1763_v49 }
 0x903   :  { %826 = vmatpush.msra.mxu1 %v1768_v50  ;;  %v845_v50 = vld [vmem:[%s1955_s8 + $0x40] sm:$0xff] }
 0x904   :  { %864 = vmatpush.msra.mxu2 %v845_v50 }
 0x905   :  { %827 = vmatpush.msra.mxu1 %v1777_v52  ;;  %v843_v52 = vld [vmem:[%s1955_s8 + $0x30] sm:$0xff]  ;;  %s988_s8 = smov [#allocation4]  }
 0x906   :  { %865 = vmatpush.msra.mxu2 %v844_v51  ;;  %s883_s30 = sshll.u32 %s988_s8, 4  ;;  %s884_s30 = int_to_ptr.vmem [resolvable:$true] %s883_s30 }
 0x908   :  { %866 = vmatpush.msra.mxu2 %v843_v52 }
 0x90a   :  { %867 = vmatpush.msra.mxu2 %v842_v53 }
 0x90c   :  { %868 = vmatpush.msra.mxu2 %v841_v54 }
 0x90e   :  { %869 = vmatpush.msra.mxu2 %v840_v55 }
 0x910   :  { %870 = vmatpush.msra.mxu2 %v839_v56 }
 0x912   :  { %871 = vmatpush.msra.mxu2 %v838_v16 }
 0x914   :  { %872 = vmatpush.msra.mxu2 %v837_v57 }
 0x963   :  { %v596_v60 = vpop.f32.mrf.mxu1 }
 0x964   :  { %v597_v61 = vadd.f32 %v911_v59, %v596_v60 }
 0x966   :  { %602 = vst [vmem:[#allocation3] sm:$0xff] %v597_v61 }
 0x96b   :  { %v599_v62 = vpop.f32.mrf.mxu1 }
 0x96c   :  { %v600_v63 = vadd.f32 %v911_v59, %v599_v62 }
 0x96d   :  { %v620_v1 = vld [vmem:[#allocation3] sm:$0x3]  ;;  %v647_v7 = vld [vmem:[#allocation3 + $0x2] sm:$0x3]  ;;  %v674_v13 = vld [vmem:[#allocation3 + $0x4] sm:$0x3] }
 0x96e   :  { %603 = vst [vmem:[#allocation3 + $0x8] sm:$0xff] %v600_v63  ;;  %v701_v20 = vld [vmem:[#allocation3 + $0x6] sm:$0x3]  ;;  %v756_v32 = vld [vmem:[#allocation3 + $0x4] sm:$0x3] }
 0x96f   :  { %v729_v26 = vld [vmem:[#allocation3 + $0x6] sm:$0x3]  ;;  %v783_v45 = vld [vmem:[#allocation3 + $0x2] sm:$0x3]  ;;  %v810_v59 = vld [vmem:[#allocation3] sm:$0x3] }
 0x975   :  { %v621_v2 = vld [vmem:[#allocation3 + $0xe] sm:$0x3]  ;;  %v648_v6 = vld [vmem:[#allocation3 + $0xc] sm:$0x3]  ;;  %v675_v12 = vld [vmem:[#allocation3 + $0xa] sm:$0x3] }
 0x976   :  { %v622_v3 = vsel %vm55_vm0, %v620_v1, %v621_v2  ;;  %v649_v8 = vsel %vm55_vm0, %v647_v7, %v648_v6  ;;  %v676_v14 = vsel %vm55_vm0, %v674_v13, %v675_v12  ;;  %v702_v19 = vld [vmem:[#allocation3 + $0x8] sm:$0x3]  ;;  %v755_v31 = vld [vmem:[#allocation3 + $0xa] sm:$0x3]  ;;  %v782_v44 = vld [vmem:[#allocation3 + $0xc] sm:$0x3] }
 0x977   :  { %v643_v4 = vadd.f32 %v640_v0, %v622_v3  ;;  %v703_v21 = vsel %vm55_vm0, %v701_v20, %v702_v19  ;;  %v728_v25 = vld [vmem:[#allocation3 + $0x8] sm:$0x3]  ;;  %v757_v33 = vsel %vm55_vm0, %v755_v31, %v756_v32  ;;  %v784_v46 = vsel %vm55_vm0, %v782_v44, %v783_v45  ;;  %v809_v58 = vld [vmem:[#allocation3 + $0xe] sm:$0x3]  ;;  %v912_v1 = vld [vmem:[%s1956_s9] ss:$0 sm:$0xff] }
 0x978   :  { %v730_v27 = vsel %vm55_vm0, %v728_v25, %v729_v26  ;;  %v811_v60 = vsel %vm55_vm0, %v809_v58, %v810_v59 }
 0x979   :  { %945 = vtanh.f32 %v643_v4 }
 0x97f   :  { %v946_v5 = vpop.eup %945 }
 0x980   :  { %645 = vst.msk [vmem:[#allocation2] sm:$0x3] %vm79_vm1, %v946_v5  ;;  %666 = vmatmul.f32.vlgmr.msra.gmra.mxu3 %v946_v5 }
 0x981   :  { %646 = vst.msk [vmem:[#allocation2 + $0xe] sm:$0x3] %vm81_vm2, %v946_v5 }
 0xa03   :  { %v667_v9 = vpop.f32.mrf.mxu3 }
 0xa04   :  { %v670_v10 = vadd.f32 %v667_v9, %v649_v8 }
 0xa06   :  { %947 = vtanh.f32 %v670_v10 }
 0xa0c   :  { %v948_v11 = vpop.eup %947 }
 0xa0d   :  { %672 = vst.msk [vmem:[#allocation2 + $0x2] sm:$0x3] %vm79_vm1, %v948_v11  ;;  %693 = vmatmul.f32.vlgmr.msrb.gmra.mxu0 %v948_v11 }
 0xa0e   :  { %673 = vst.msk [vmem:[#allocation2 + $0xc] sm:$0x3] %vm81_vm2, %v948_v11 }
 0xa8a   :  { %v694_v15 = vpop.f32.mrf.mxu0 }
 0xa8b   :  { %v697_v17 = vadd.f32 %v694_v15, %v676_v14 }
 0xa8d   :  { %949 = vtanh.f32 %v697_v17 }
 0xa93   :  { %v950_v18 = vpop.eup %949 }
 0xa94   :  { %699 = vst.msk [vmem:[#allocation2 + $0x4] sm:$0x3] %vm79_vm1, %v950_v18  ;;  %720 = vmatmul.f32.vlgmr.msrb.gmra.mxu1 %v950_v18 }
 0xa95   :  { %700 = vst.msk [vmem:[#allocation2 + $0xa] sm:$0x3] %vm81_vm2, %v950_v18 }
 0xb11   :  { %v721_v22 = vpop.f32.mrf.mxu1 }
 0xb12   :  { %v724_v23 = vadd.f32 %v721_v22, %v703_v21 }
 0xb14   :  { %951 = vtanh.f32 %v724_v23 }
 0xb1a   :  { %v952_v24 = vpop.eup %951 }
 0xb1b   :  { %726 = vst.msk [vmem:[#allocation2 + $0x6] sm:$0x3] %vm79_vm1, %v952_v24  ;;  %747 = vmatmul.f32.vlgmr.msrb.gmra.mxu2 %v952_v24 }
 0xb1c   :  { %727 = vst.msk [vmem:[#allocation2 + $0x8] sm:$0x3] %vm81_vm2, %v952_v24 }
 0xb9e   :  { %v748_v28 = vpop.f32.mrf.mxu2 }
 0xb9f   :  { %v751_v29 = vadd.f32 %v748_v28, %v730_v27 }
 0xba1   :  { %953 = vtanh.f32 %v751_v29 }
 0xba7   :  { %v954_v30 = vpop.eup %953 }
 0xba8   :  { %753 = vst.msk [vmem:[#allocation2 + $0x8] sm:$0x3] %vm79_vm1, %v954_v30  ;;  %774 = vmatmul.f32.vlgmr.msrb.gmra.mxu3 %v954_v30 }
 0xba9   :  { %754 = vst.msk [vmem:[#allocation2 + $0x6] sm:$0x3] %vm81_vm2, %v954_v30 }
 0xc2b   :  { %v775_v34 = vpop.f32.mrf.mxu3 }
 0xc2c   :  { %v778_v35 = vadd.f32 %v775_v34, %v757_v33 }
 0xc2e   :  { %955 = vtanh.f32 %v778_v35 }
 0xc34   :  { %v956_v36 = vpop.eup %955 }
 0xc35   :  { %780 = vst.msk [vmem:[#allocation2 + $0xa] sm:$0x3] %vm79_vm1, %v956_v36  ;;  %801 = vmatmul.f32.vlgmr.msra.gmra.mxu0 %v956_v36 }
 0xc36   :  { %781 = vst.msk [vmem:[#allocation2 + $0x4] sm:$0x3] %vm81_vm2, %v956_v36 }
 0xcb2   :  { %v802_v47 = vpop.f32.mrf.mxu0 }
 0xcb3   :  { %v805_v48 = vadd.f32 %v802_v47, %v784_v46 }
 0xcb5   :  { %957 = vtanh.f32 %v805_v48 }
 0xcbb   :  { %v958_v49 = vpop.eup %957 }
 0xcbc   :  { %807 = vst.msk [vmem:[#allocation2 + $0xc] sm:$0x3] %vm79_vm1, %v958_v49  ;;  %828 = vmatmul.f32.vlgmr.msra.gmra.mxu1 %v958_v49 }
 0xcbd   :  { %808 = vst.msk [vmem:[#allocation2 + $0x2] sm:$0x3] %vm81_vm2, %v958_v49 }
 0xd39   :  { %v829_v61 = vpop.f32.mrf.mxu1 }
 0xd3a   :  { %v832_v62 = vadd.f32 %v829_v61, %v811_v60 }
 0xd3c   :  { %959 = vtanh.f32 %v832_v62 }
 0xd42   :  { %v960_v63 = vpop.eup %959 }
 0xd43   :  { %835 = vst.msk [vmem:[#allocation2] sm:$0x3] %vm81_vm2, %v960_v63 }
 0xd44   :  { %834 = vst.msk [vmem:[#allocation2 + $0xe] sm:$0x3] %vm79_vm1, %v960_v63 }
 0xd4b   :  { %v836_v0 = vld [vmem:[#allocation2 + $0xe] sm:$0x3] }
 0xd4c   :  { %873 = vmatmul.f32.vlgmr.msra.gmra.mxu2 %v836_v0 }
 0xdcf   :  { %v874_v2 = vpop.f32.mrf.mxu2 }
 0xdd0   :  { %v875_v3 = vadd.f32 %v912_v1, %v874_v2 }
 0xdd2   :  { %877 = vst [vmem:[#allocation4] sm:$0x3] %v875_v3 }
 0xdd3   :  { %888 = dma.vmem_to_hbm [thread:$0]  %s884_s30, 32, %s886_s13, [#allocation5]  }
 0xdd4   :  { %985 = dma.done.wait [#allocation5], 32  }
 0xdd5   :  { %986 = vsyncadd [#allocation5], 4294967264 }
 0xdd6   :  { %893 = vsyncpa [#allocation5], 1 }

</bundles_post_ra>
